<compile_context>
chip_gen: v7x
topology: tpu7x:2x2x1
jax: 0.10.0
libtpu: 0.0.40
codegen_flags: <defaults>
</compile_context>

<pallas_src>
import jax
import jax.numpy as jnp
from jax.experimental import pallas as pl
from jax.experimental.pallas import tpu as pltpu


def upconv_kernel(rows_ref, x_ref, sel_ref, w_ref, o_ref, slab_ref, patch_ref):
    """One (batch, output-row-tile) step of nearest-upsample + conv3x3 + LeakyReLU(0.1).

    rows_ref : (n_tiles, n_slab) int32 SMEM  - source input row per slab row, -1 = zero-pad row
    x_ref    : (Cin, Hin, Win)               - pre-upsample input (batch dim squeezed), NCHW
    sel_ref  : (KW, Win, Wout)               - constant 0/1 upsample+shift+pad column selection
    w_ref    : (Cout, KW*KH*Cin)             - conv weight, K ordered (kw, kh, ci)
    o_ref    : (Cout, tile_h*Wout)           - output tile, spatial flattened onto lanes
    slab_ref : (Cin, n_slab, Win)  VMEM scratch
    patch_ref: (KW*KH*Cin, tile_h*Wout) VMEM scratch (im2col patch)
    """
    t = pl.program_id(1)
    Cin, _, Win = x_ref.shape
    KW, _, Wout = sel_ref.shape
    K = w_ref.shape[1]
    KH = K // (KW * Cin)
    n_slab = slab_ref.shape[1]
    TH = n_slab - (KH - 1)

    # --- H: gather nearest-neighbour source rows for this tile (+ zeroed halo rows) ---
    for j in range(n_slab):                                   # static unroll, n_slab = tile_h + KH - 1
        r = rows_ref[t, j]                                    # SMEM scalar; -1 marks an H-padding row
        src = x_ref[:, pl.ds(jnp.maximum(r, 0), 1), :]        # (Cin, 1, Win), dynamic row slice
        slab_ref[:, pl.ds(j, 1), :] = src * (r >= 0).astype(src.dtype)

    slab = slab_ref[...].reshape(Cin * n_slab, Win)

    # --- W: nearest upsample + kw shift + zero pad as one 0/1 selection matmul per tap
    #        column (MXU), then assemble the (KH*KW*Cin, tile_h*Wout) im2col patch. ---
    for kw in range(KW):
        u = jnp.dot(slab, sel_ref[kw], preferred_element_type=jnp.float32)
        u = u.reshape(Cin, n_slab, Wout)
        for kh in range(KH):
            row0 = (kw * KH + kh) * Cin
            tap = u[:, kh:kh + TH, :].reshape(Cin, TH * Wout)
            patch_ref[pl.ds(row0, Cin), :] = tap.astype(patch_ref.dtype)

    # --- single fat contraction (Cout, K) @ (K, tile_h*Wout) + LeakyReLU(0.1),
    #     lane-dense store straight into the NCHW output. ---
    acc = jnp.dot(w_ref[...], patch_ref[...], preferred_element_type=jnp.float32)
    acc = jnp.where(acc >= 0, acc, 0.1 * acc)
    o_ref[...] = acc.astype(o_ref.dtype)


def upconv2d(x_nchw, weight_oihw, shape, *, tile_h=None):
    """UpConv2d forward: nearest interpolate to `shape`, conv (pad=k//2, no bias), LeakyReLU(0.1).

    x_nchw      : (N, Cin, Hin, Win)
    weight_oihw : (Cout, Cin, KH, KW)
    shape       : (Hout, Wout)
    returns     : (N, Cout, Hout, Wout)
    """
    N, Cin, Hin, Win = x_nchw.shape
    Cout, Cin_w, KH, KW = weight_oihw.shape
    assert Cin_w == Cin
    Hout, Wout = shape
    pad_h, pad_w = KH // 2, KW // 2

    # --- pick an output-row tile: divides Hout, and tile_h*Wout is lane-aligned (x128)
    #     unless we take the whole image.  Bounds VMEM independent of Hout (v7x). ---
    if tile_h is None:
        cap = max(1, min(128, 8192 // max(Wout, 1)))
        tile_h = Hout                                   # whole image: always a legal block
        if Hout > cap:
            for d in range(1, cap + 1):
                if Hout % d == 0 and (d * Wout) % 128 == 0:
                    tile_h = d                          # keep the largest qualifying divisor
    assert Hout % tile_h == 0, "tile_h must divide Hout"
    assert tile_h == Hout or (tile_h * Wout) % 128 == 0, \
        "tile_h*Wout must be a multiple of 128 (or tile_h == Hout)"
    n_tiles = Hout // tile_h
    n_slab = tile_h + KH - 1

    # --- static per-tile row table: source input row (PyTorch nearest = floor(dst*in/out))
    #     for every slab row, -1 for rows that fall in the zero padding. ---
    yy = jnp.arange(n_tiles)[:, None] * tile_h + jnp.arange(n_slab)[None, :] - pad_h
    rows = jnp.where((yy >= 0) & (yy < Hout),
                     (jnp.clip(yy, 0, Hout - 1) * Hin) // Hout,
                     -1).astype(jnp.int32)                                  # (n_tiles, n_slab)

    # --- constant 0/1 selection matrices: W-nearest-upsample + kw tap shift + W zero pad.
    #     sel[kw, u, xo] = 1  iff  (xo + kw - pad_w) is a valid output col whose nearest
    #     source col is u.  Applying them as matmuls keeps all W handling on the MXU. ---
    xs = jnp.arange(Wout)[None, :] + jnp.arange(KW)[:, None] - pad_w         # (KW, Wout)
    w_valid = (xs >= 0) & (xs < Wout)
    w_src = (jnp.clip(xs, 0, Wout - 1) * Win) // Wout                        # (KW, Wout)
    sel = ((jnp.arange(Win)[None, :, None] == w_src[:, None, :])
           & w_valid[:, None, :]).astype(x_nchw.dtype)                       # (KW, Win, Wout)

    # --- weight as a single (Cout, K) matrix with K ordered (kw, kh, ci), matching the
    #     patch assembly in the kernel (tiny tensor, wrapper-side transform is free). ---
    w2 = jnp.transpose(weight_oihw, (0, 3, 2, 1)).reshape(Cout, KW * KH * Cin)

    out_flat = pl.pallas_call(
        upconv_kernel,
        out_shape=jax.ShapeDtypeStruct((N, Cout, Hout * Wout), x_nchw.dtype),
        grid_spec=pltpu.PrefetchScalarGridSpec(
            num_scalar_prefetch=1,                      # rows table -> SMEM
            grid=(N, n_tiles),
            in_specs=[
                # whole (small) pre-upsample image per batch; constant in t -> stays resident
                pl.BlockSpec((None, Cin, Hin, Win), lambda b, t, rt: (b, 0, 0, 0)),
                # constant selection matrices / weights: fetched once
                pl.BlockSpec((KW, Win, Wout), lambda b, t, rt: (0, 0, 0)),
                pl.BlockSpec((Cout, KW * KH * Cin), lambda b, t, rt: (0, 0)),
            ],
            out_specs=pl.BlockSpec((None, Cout, tile_h * Wout),
                                   lambda b, t, rt: (b, 0, t)),
            scratch_shapes=[
                pltpu.VMEM((Cin, n_slab, Win), x_nchw.dtype),                # row slab
                pltpu.VMEM((KW * KH * Cin, tile_h * Wout), x_nchw.dtype),    # im2col patch
            ],
        ),
        compiler_params=pltpu.CompilerParams(
            dimension_semantics=("parallel", "parallel")),   # batch & row tiles independent
    )(rows, x_nchw, sel, w2)

    # free reshape back to NCHW 4-D (no data movement: last dims are contiguous)
    return out_flat.reshape(N, Cout, Hout, Wout)


def _reference(x_nchw, weight_oihw, shape):
    """Pure-JAX reference (nearest upsample + conv + LeakyReLU(0.1))."""
    N, Cin, Hin, Win = x_nchw.shape
    Cout, _, KH, KW = weight_oihw.shape
    Hout, Wout = shape
    hi = (jnp.arange(Hout) * Hin) // Hout
    wi = (jnp.arange(Wout) * Win) // Wout
    up = x_nchw[:, :, hi[:, None], wi[None, :]]
    conv = jax.lax.conv_general_dilated(
        up, weight_oihw, window_strides=(1, 1),
        padding=[(KH // 2, KH // 2), (KW // 2, KW // 2)],
        dimension_numbers=("NCHW", "OIHW", "NCHW"))
    return jnp.where(conv >= 0, conv, 0.1 * conv)


if __name__ == "__main__":
    key = jax.random.PRNGKey(0)
    k1, k2, k3, k4 = jax.random.split(key, 4)

    # --- Config A: 2x nearest upsample, multiple row tiles (exercises halo/table logic) ---
    N, Cin, Cout, Hin, Win = 2, 4, 8, 16, 16
    KH = KW = 3
    out_hw = (32, 32)
    x = jax.random.normal(k1, (N, Cin, Hin, Win), dtype=jnp.float32)
    fan_in = Cin * KH * KW
    bound = (6.0 / fan_in) ** 0.5
    w = jax.random.uniform(k2, (Cout, Cin, KH, KW), jnp.float32, -bound, bound)

    out = jax.block_until_ready(upconv2d(x, w, out_hw, tile_h=8))
    ref = _reference(x, w, out_hw)
    assert out.shape == (N, Cout) + out_hw
    assert jnp.allclose(out, ref, atol=1e-4, rtol=1e-4)

    # --- Config B: non-integer upsample ratio, odd channel counts, auto tile choice ---
    N2, Cin2, Cout2, Hin2, Win2 = 1, 3, 5, 7, 5
    out_hw2 = (16, 24)
    x2 = jax.random.normal(k3, (N2, Cin2, Hin2, Win2), dtype=jnp.float32)
    fan_in2 = Cin2 * KH * KW
    bound2 = (6.0 / fan_in2) ** 0.5
    w2_ = jax.random.uniform(k4, (Cout2, Cin2, KH, KW), jnp.float32, -bound2, bound2)

    out2 = jax.block_until_ready(upconv2d(x2, w2_, out_hw2))
    ref2 = _reference(x2, w2_, out_hw2)
    assert out2.shape == (N2, Cout2) + out_hw2
    assert jnp.allclose(out2, ref2, atol=1e-4, rtol=1e-4)

    print("KERNEL_OK")
</pallas_src>

<mosaic_0001>
module attributes {stable_mosaic.version = 11 : i64} {
  func.func @upconv_kernel(%arg0: i32, %arg1: i32, %arg2: memref<4x10xi32, #tpu.memory_space<smem>>, %arg3: memref<1x4x16x16xf32, #tpu.memory_space<vmem>>, %arg4: memref<3x16x32xf32, #tpu.memory_space<vmem>>, %arg5: memref<8x36xf32, #tpu.memory_space<vmem>>, %arg6: memref<1x8x256xf32, #tpu.memory_space<vmem>>, %arg7: memref<4x10x16xf32, #tpu.memory_space<vmem>>, %arg8: memref<36x256xf32, #tpu.memory_space<vmem>>) attributes {dimension_semantics = [#tpu.dimension_semantics<parallel>, #tpu.dimension_semantics<parallel>], iteration_bounds = array<i64: 2, 4>, scalar_prefetch = 1 : i64, scratch_operands = 2 : i64, tpu.core_type = #tpu.core_type<tc>, window_params = [{transform_indices = @transform_0, window_bounds = array<i64: 1, 4, 16, 16>}, {pipeline_mode = #tpu.pipeline_mode<synchronous>, transform_indices = @transform_1, window_bounds = array<i64: 3, 16, 32>}, {pipeline_mode = #tpu.pipeline_mode<synchronous>, transform_indices = @transform_2, window_bounds = array<i64: 8, 36>}, {transform_indices = @transform_3, window_bounds = array<i64: 1, 8, 256>}]} {
    %0 = arith.index_cast %arg1 : i32 to index
    %c0 = arith.constant 0 : index
    %1 = memref.load %arg2[%0, %c0] : memref<4x10xi32, #tpu.memory_space<smem>>
    %c0_i32 = arith.constant 0 : i32
    %2 = arith.maxsi %1, %c0_i32 : i32
    %c0_0 = arith.constant 0 : index
    %c0_1 = arith.constant 0 : index
    %3 = arith.index_cast %2 : i32 to index
    %c0_2 = arith.constant 0 : index
    %4 = vector.load %arg3[%c0_0, %c0_1, %3, %c0_2] : memref<1x4x16x16xf32, #tpu.memory_space<vmem>>, vector<1x4x1x16xf32>
    %5 = vector.shape_cast %4 : vector<1x4x1x16xf32> to vector<4x1x16xf32>
    %c0_i32_3 = arith.constant 0 : i32
    %6 = arith.cmpi sge, %1, %c0_i32_3 : i32
    %7 = arith.extui %6 : i1 to i32
    %8 = arith.sitofp %7 : i32 to f32
    %9 = vector.broadcast %8 : f32 to vector<4x1x16xf32>
    %10 = arith.mulf %5, %9 : vector<4x1x16xf32>
    %c0_4 = arith.constant 0 : index
    %c0_5 = arith.constant 0 : index
    %c0_6 = arith.constant 0 : index
    %11 = vector.load %arg7[%c0_4, %c0_5, %c0_6] : memref<4x10x16xf32, #tpu.memory_space<vmem>>, vector<4x1x16xf32>
    tpu.vector_store %arg7[%c0_4, %c0_5, %c0_6], %10 {strides = array<i32>} : memref<4x10x16xf32, #tpu.memory_space<vmem>>, vector<4x1x16xf32>,
    %12 = arith.index_cast %arg1 : i32 to index
    %c1 = arith.constant 1 : index
    %13 = memref.load %arg2[%12, %c1] : memref<4x10xi32, #tpu.memory_space<smem>>
    %c0_i32_7 = arith.constant 0 : i32
    %14 = arith.maxsi %13, %c0_i32_7 : i32
    %c0_8 = arith.constant 0 : index
    %c0_9 = arith.constant 0 : index
    %15 = arith.index_cast %14 : i32 to index
    %c0_10 = arith.constant 0 : index
    %16 = vector.load %arg3[%c0_8, %c0_9, %15, %c0_10] : memref<1x4x16x16xf32, #tpu.memory_space<vmem>>, vector<1x4x1x16xf32>
    %17 = vector.shape_cast %16 : vector<1x4x1x16xf32> to vector<4x1x16xf32>
    %c0_i32_11 = arith.constant 0 : i32
    %18 = arith.cmpi sge, %13, %c0_i32_11 : i32
    %19 = arith.extui %18 : i1 to i32
    %20 = arith.sitofp %19 : i32 to f32
    %21 = vector.broadcast %20 : f32 to vector<4x1x16xf32>
    %22 = arith.mulf %17, %21 : vector<4x1x16xf32>
    %c0_12 = arith.constant 0 : index
    %c1_13 = arith.constant 1 : index
    %c0_14 = arith.constant 0 : index
    %23 = vector.load %arg7[%c0_12, %c1_13, %c0_14] : memref<4x10x16xf32, #tpu.memory_space<vmem>>, vector<4x1x16xf32>
    tpu.vector_store %arg7[%c0_12, %c1_13, %c0_14], %22 {strides = array<i32>} : memref<4x10x16xf32, #tpu.memory_space<vmem>>, vector<4x1x16xf32>,
    %24 = arith.index_cast %arg1 : i32 to index
    %c2 = arith.constant 2 : index
    %25 = memref.load %arg2[%24, %c2] : memref<4x10xi32, #tpu.memory_space<smem>>
    %c0_i32_15 = arith.constant 0 : i32
    %26 = arith.maxsi %25, %c0_i32_15 : i32
    %c0_16 = arith.constant 0 : index
    %c0_17 = arith.constant 0 : index
    %27 = arith.index_cast %26 : i32 to index
    %c0_18 = arith.constant 0 : index
    %28 = vector.load %arg3[%c0_16, %c0_17, %27, %c0_18] : memref<1x4x16x16xf32, #tpu.memory_space<vmem>>, vector<1x4x1x16xf32>
    %29 = vector.shape_cast %28 : vector<1x4x1x16xf32> to vector<4x1x16xf32>
    %c0_i32_19 = arith.constant 0 : i32
    %30 = arith.cmpi sge, %25, %c0_i32_19 : i32
    %31 = arith.extui %30 : i1 to i32
    %32 = arith.sitofp %31 : i32 to f32
    %33 = vector.broadcast %32 : f32 to vector<4x1x16xf32>
    %34 = arith.mulf %29, %33 : vector<4x1x16xf32>
    %c0_20 = arith.constant 0 : index
    %c2_21 = arith.constant 2 : index
    %c0_22 = arith.constant 0 : index
    %35 = vector.load %arg7[%c0_20, %c2_21, %c0_22] : memref<4x10x16xf32, #tpu.memory_space<vmem>>, vector<4x1x16xf32>
    tpu.vector_store %arg7[%c0_20, %c2_21, %c0_22], %34 {strides = array<i32>} : memref<4x10x16xf32, #tpu.memory_space<vmem>>, vector<4x1x16xf32>,
    %36 = arith.index_cast %arg1 : i32 to index
    %c3 = arith.constant 3 : index
    %37 = memref.load %arg2[%36, %c3] : memref<4x10xi32, #tpu.memory_space<smem>>
    %c0_i32_23 = arith.constant 0 : i32
    %38 = arith.maxsi %37, %c0_i32_23 : i32
    %c0_24 = arith.constant 0 : index
    %c0_25 = arith.constant 0 : index
    %39 = arith.index_cast %38 : i32 to index
    %c0_26 = arith.constant 0 : index
    %40 = vector.load %arg3[%c0_24, %c0_25, %39, %c0_26] : memref<1x4x16x16xf32, #tpu.memory_space<vmem>>, vector<1x4x1x16xf32>
    %41 = vector.shape_cast %40 : vector<1x4x1x16xf32> to vector<4x1x16xf32>
    %c0_i32_27 = arith.constant 0 : i32
    %42 = arith.cmpi sge, %37, %c0_i32_27 : i32
    %43 = arith.extui %42 : i1 to i32
    %44 = arith.sitofp %43 : i32 to f32
    %45 = vector.broadcast %44 : f32 to vector<4x1x16xf32>
    %46 = arith.mulf %41, %45 : vector<4x1x16xf32>
    %c0_28 = arith.constant 0 : index
    %c3_29 = arith.constant 3 : index
    %c0_30 = arith.constant 0 : index
    %47 = vector.load %arg7[%c0_28, %c3_29, %c0_30] : memref<4x10x16xf32, #tpu.memory_space<vmem>>, vector<4x1x16xf32>
    tpu.vector_store %arg7[%c0_28, %c3_29, %c0_30], %46 {strides = array<i32>} : memref<4x10x16xf32, #tpu.memory_space<vmem>>, vector<4x1x16xf32>,
    %48 = arith.index_cast %arg1 : i32 to index
    %c4 = arith.constant 4 : index
    %49 = memref.load %arg2[%48, %c4] : memref<4x10xi32, #tpu.memory_space<smem>>
    %c0_i32_31 = arith.constant 0 : i32
    %50 = arith.maxsi %49, %c0_i32_31 : i32
    %c0_32 = arith.constant 0 : index
    %c0_33 = arith.constant 0 : index
    %51 = arith.index_cast %50 : i32 to index
    %c0_34 = arith.constant 0 : index
    %52 = vector.load %arg3[%c0_32, %c0_33, %51, %c0_34] : memref<1x4x16x16xf32, #tpu.memory_space<vmem>>, vector<1x4x1x16xf32>
    %53 = vector.shape_cast %52 : vector<1x4x1x16xf32> to vector<4x1x16xf32>
    %c0_i32_35 = arith.constant 0 : i32
    %54 = arith.cmpi sge, %49, %c0_i32_35 : i32
    %55 = arith.extui %54 : i1 to i32
    %56 = arith.sitofp %55 : i32 to f32
    %57 = vector.broadcast %56 : f32 to vector<4x1x16xf32>
    %58 = arith.mulf %53, %57 : vector<4x1x16xf32>
    %c0_36 = arith.constant 0 : index
    %c4_37 = arith.constant 4 : index
    %c0_38 = arith.constant 0 : index
    %59 = vector.load %arg7[%c0_36, %c4_37, %c0_38] : memref<4x10x16xf32, #tpu.memory_space<vmem>>, vector<4x1x16xf32>
    tpu.vector_store %arg7[%c0_36, %c4_37, %c0_38], %58 {strides = array<i32>} : memref<4x10x16xf32, #tpu.memory_space<vmem>>, vector<4x1x16xf32>,
    %60 = arith.index_cast %arg1 : i32 to index
    %c5 = arith.constant 5 : index
    %61 = memref.load %arg2[%60, %c5] : memref<4x10xi32, #tpu.memory_space<smem>>
    %c0_i32_39 = arith.constant 0 : i32
    %62 = arith.maxsi %61, %c0_i32_39 : i32
    %c0_40 = arith.constant 0 : index
    %c0_41 = arith.constant 0 : index
    %63 = arith.index_cast %62 : i32 to index
    %c0_42 = arith.constant 0 : index
    %64 = vector.load %arg3[%c0_40, %c0_41, %63, %c0_42] : memref<1x4x16x16xf32, #tpu.memory_space<vmem>>, vector<1x4x1x16xf32>
    %65 = vector.shape_cast %64 : vector<1x4x1x16xf32> to vector<4x1x16xf32>
    %c0_i32_43 = arith.constant 0 : i32
    %66 = arith.cmpi sge, %61, %c0_i32_43 : i32
    %67 = arith.extui %66 : i1 to i32
    %68 = arith.sitofp %67 : i32 to f32
    %69 = vector.broadcast %68 : f32 to vector<4x1x16xf32>
    %70 = arith.mulf %65, %69 : vector<4x1x16xf32>
    %c0_44 = arith.constant 0 : index
    %c5_45 = arith.constant 5 : index
    %c0_46 = arith.constant 0 : index
    %71 = vector.load %arg7[%c0_44, %c5_45, %c0_46] : memref<4x10x16xf32, #tpu.memory_space<vmem>>, vector<4x1x16xf32>
    tpu.vector_store %arg7[%c0_44, %c5_45, %c0_46], %70 {strides = array<i32>} : memref<4x10x16xf32, #tpu.memory_space<vmem>>, vector<4x1x16xf32>,
    %72 = arith.index_cast %arg1 : i32 to index
    %c6 = arith.constant 6 : index
    %73 = memref.load %arg2[%72, %c6] : memref<4x10xi32, #tpu.memory_space<smem>>
    %c0_i32_47 = arith.constant 0 : i32
    %74 = arith.maxsi %73, %c0_i32_47 : i32
    %c0_48 = arith.constant 0 : index
    %c0_49 = arith.constant 0 : index
    %75 = arith.index_cast %74 : i32 to index
    %c0_50 = arith.constant 0 : index
    %76 = vector.load %arg3[%c0_48, %c0_49, %75, %c0_50] : memref<1x4x16x16xf32, #tpu.memory_space<vmem>>, vector<1x4x1x16xf32>
    %77 = vector.shape_cast %76 : vector<1x4x1x16xf32> to vector<4x1x16xf32>
    %c0_i32_51 = arith.constant 0 : i32
    %78 = arith.cmpi sge, %73, %c0_i32_51 : i32
    %79 = arith.extui %78 : i1 to i32
    %80 = arith.sitofp %79 : i32 to f32
    %81 = vector.broadcast %80 : f32 to vector<4x1x16xf32>
    %82 = arith.mulf %77, %81 : vector<4x1x16xf32>
    %c0_52 = arith.constant 0 : index
    %c6_53 = arith.constant 6 : index
    %c0_54 = arith.constant 0 : index
    %83 = vector.load %arg7[%c0_52, %c6_53, %c0_54] : memref<4x10x16xf32, #tpu.memory_space<vmem>>, vector<4x1x16xf32>
    tpu.vector_store %arg7[%c0_52, %c6_53, %c0_54], %82 {strides = array<i32>} : memref<4x10x16xf32, #tpu.memory_space<vmem>>, vector<4x1x16xf32>,
    %84 = arith.index_cast %arg1 : i32 to index
    %c7 = arith.constant 7 : index
    %85 = memref.load %arg2[%84, %c7] : memref<4x10xi32, #tpu.memory_space<smem>>
    %c0_i32_55 = arith.constant 0 : i32
    %86 = arith.maxsi %85, %c0_i32_55 : i32
    %c0_56 = arith.constant 0 : index
    %c0_57 = arith.constant 0 : index
    %87 = arith.index_cast %86 : i32 to index
    %c0_58 = arith.constant 0 : index
    %88 = vector.load %arg3[%c0_56, %c0_57, %87, %c0_58] : memref<1x4x16x16xf32, #tpu.memory_space<vmem>>, vector<1x4x1x16xf32>
    %89 = vector.shape_cast %88 : vector<1x4x1x16xf32> to vector<4x1x16xf32>
    %c0_i32_59 = arith.constant 0 : i32
    %90 = arith.cmpi sge, %85, %c0_i32_59 : i32
    %91 = arith.extui %90 : i1 to i32
    %92 = arith.sitofp %91 : i32 to f32
    %93 = vector.broadcast %92 : f32 to vector<4x1x16xf32>
    %94 = arith.mulf %89, %93 : vector<4x1x16xf32>
    %c0_60 = arith.constant 0 : index
    %c7_61 = arith.constant 7 : index
    %c0_62 = arith.constant 0 : index
    %95 = vector.load %arg7[%c0_60, %c7_61, %c0_62] : memref<4x10x16xf32, #tpu.memory_space<vmem>>, vector<4x1x16xf32>
    tpu.vector_store %arg7[%c0_60, %c7_61, %c0_62], %94 {strides = array<i32>} : memref<4x10x16xf32, #tpu.memory_space<vmem>>, vector<4x1x16xf32>,
    %96 = arith.index_cast %arg1 : i32 to index
    %c8 = arith.constant 8 : index
    %97 = memref.load %arg2[%96, %c8] : memref<4x10xi32, #tpu.memory_space<smem>>
    %c0_i32_63 = arith.constant 0 : i32
    %98 = arith.maxsi %97, %c0_i32_63 : i32
    %c0_64 = arith.constant 0 : index
    %c0_65 = arith.constant 0 : index
    %99 = arith.index_cast %98 : i32 to index
    %c0_66 = arith.constant 0 : index
    %100 = vector.load %arg3[%c0_64, %c0_65, %99, %c0_66] : memref<1x4x16x16xf32, #tpu.memory_space<vmem>>, vector<1x4x1x16xf32>
    %101 = vector.shape_cast %100 : vector<1x4x1x16xf32> to vector<4x1x16xf32>
    %c0_i32_67 = arith.constant 0 : i32
    %102 = arith.cmpi sge, %97, %c0_i32_67 : i32
    %103 = arith.extui %102 : i1 to i32
    %104 = arith.sitofp %103 : i32 to f32
    %105 = vector.broadcast %104 : f32 to vector<4x1x16xf32>
    %106 = arith.mulf %101, %105 : vector<4x1x16xf32>
    %c0_68 = arith.constant 0 : index
    %c8_69 = arith.constant 8 : index
    %c0_70 = arith.constant 0 : index
    %107 = vector.load %arg7[%c0_68, %c8_69, %c0_70] : memref<4x10x16xf32, #tpu.memory_space<vmem>>, vector<4x1x16xf32>
    tpu.vector_store %arg7[%c0_68, %c8_69, %c0_70], %106 {strides = array<i32>} : memref<4x10x16xf32, #tpu.memory_space<vmem>>, vector<4x1x16xf32>,
    %108 = arith.index_cast %arg1 : i32 to index
    %c9 = arith.constant 9 : index
    %109 = memref.load %arg2[%108, %c9] : memref<4x10xi32, #tpu.memory_space<smem>>
    %c0_i32_71 = arith.constant 0 : i32
    %110 = arith.maxsi %109, %c0_i32_71 : i32
    %c0_72 = arith.constant 0 : index
    %c0_73 = arith.constant 0 : index
    %111 = arith.index_cast %110 : i32 to index
    %c0_74 = arith.constant 0 : index
    %112 = vector.load %arg3[%c0_72, %c0_73, %111, %c0_74] : memref<1x4x16x16xf32, #tpu.memory_space<vmem>>, vector<1x4x1x16xf32>
    %113 = vector.shape_cast %112 : vector<1x4x1x16xf32> to vector<4x1x16xf32>
    %c0_i32_75 = arith.constant 0 : i32
    %114 = arith.cmpi sge, %109, %c0_i32_75 : i32
    %115 = arith.extui %114 : i1 to i32
    %116 = arith.sitofp %115 : i32 to f32
    %117 = vector.broadcast %116 : f32 to vector<4x1x16xf32>
    %118 = arith.mulf %113, %117 : vector<4x1x16xf32>
    %c0_76 = arith.constant 0 : index
    %c9_77 = arith.constant 9 : index
    %c0_78 = arith.constant 0 : index
    %119 = vector.load %arg7[%c0_76, %c9_77, %c0_78] : memref<4x10x16xf32, #tpu.memory_space<vmem>>, vector<4x1x16xf32>
    tpu.vector_store %arg7[%c0_76, %c9_77, %c0_78], %118 {strides = array<i32>} : memref<4x10x16xf32, #tpu.memory_space<vmem>>, vector<4x1x16xf32>,
    %c0_79 = arith.constant 0 : index
    %c0_80 = arith.constant 0 : index
    %c0_81 = arith.constant 0 : index
    %120 = vector.load %arg7[%c0_79, %c0_80, %c0_81] : memref<4x10x16xf32, #tpu.memory_space<vmem>>, vector<4x10x16xf32>
    %121 = vector.shape_cast %120 : vector<4x10x16xf32> to vector<40x16xf32>
    %c0_82 = arith.constant 0 : index
    %c0_83 = arith.constant 0 : index
    %c0_84 = arith.constant 0 : index
    %122 = vector.load %arg4[%c0_82, %c0_83, %c0_84] : memref<3x16x32xf32, #tpu.memory_space<vmem>>, vector<1x16x32xf32>
    %123 = vector.shape_cast %122 : vector<1x16x32xf32> to vector<16x32xf32>
    %cst = arith.constant dense<0.000000e+00> : vector<40x32xf32>
    %124 = tpu.matmul %121, %123, %cst {dimension_numbers = #tpu.dot_dimension_numbers<[1], [0], [0], [1], [0, 0, 1, 1], [], []>} : vector<40x16xf32>, vector<16x32xf32>, vector<40x32xf32> -> vector<40x32xf32>
    %125 = vector.shape_cast %124 : vector<40x32xf32> to vector<4x10x32xf32>
    %126 = vector.extract_strided_slice %125 {offsets = [0, 0, 0], sizes = [4, 8, 32], strides = [1, 1, 1]} : vector<4x10x32xf32> to vector<4x8x32xf32>
    %127 = vector.shape_cast %126 : vector<4x8x32xf32> to vector<4x256xf32>
    %c0_85 = arith.constant 0 : index
    %c0_86 = arith.constant 0 : index
    %128 = vector.load %arg8[%c0_85, %c0_86] : memref<36x256xf32, #tpu.memory_space<vmem>>, vector<4x256xf32>
    tpu.vector_store %arg8[%c0_85, %c0_86], %127 {strides = array<i32>} : memref<36x256xf32, #tpu.memory_space<vmem>>, vector<4x256xf32>,
    %129 = vector.extract_strided_slice %125 {offsets = [0, 1, 0], sizes = [4, 8, 32], strides = [1, 1, 1]} : vector<4x10x32xf32> to vector<4x8x32xf32>
    %130 = vector.shape_cast %129 : vector<4x8x32xf32> to vector<4x256xf32>
    %c4_87 = arith.constant 4 : index
    %c0_88 = arith.constant 0 : index
    %131 = vector.load %arg8[%c4_87, %c0_88] : memref<36x256xf32, #tpu.memory_space<vmem>>, vector<4x256xf32>
    tpu.vector_store %arg8[%c4_87, %c0_88], %130 {strides = array<i32>} : memref<36x256xf32, #tpu.memory_space<vmem>>, vector<4x256xf32>,
    %132 = vector.extract_strided_slice %125 {offsets = [0, 2, 0], sizes = [4, 8, 32], strides = [1, 1, 1]} : vector<4x10x32xf32> to vector<4x8x32xf32>
    %133 = vector.shape_cast %132 : vector<4x8x32xf32> to vector<4x256xf32>
    %c8_89 = arith.constant 8 : index
    %c0_90 = arith.constant 0 : index
    %134 = vector.load %arg8[%c8_89, %c0_90] : memref<36x256xf32, #tpu.memory_space<vmem>>, vector<4x256xf32>
    tpu.vector_store %arg8[%c8_89, %c0_90], %133 {strides = array<i32>} : memref<36x256xf32, #tpu.memory_space<vmem>>, vector<4x256xf32>,
    %c1_91 = arith.constant 1 : index
    %c0_92 = arith.constant 0 : index
    %c0_93 = arith.constant 0 : index
    %135 = vector.load %arg4[%c1_91, %c0_92, %c0_93] : memref<3x16x32xf32, #tpu.memory_space<vmem>>, vector<1x16x32xf32>
    %136 = vector.shape_cast %135 : vector<1x16x32xf32> to vector<16x32xf32>
    %cst_94 = arith.constant dense<0.000000e+00> : vector<40x32xf32>
    %137 = tpu.matmul %121, %136, %cst_94 {dimension_numbers = #tpu.dot_dimension_numbers<[1], [0], [0], [1], [0, 0, 1, 1], [], []>} : vector<40x16xf32>, vector<16x32xf32>, vector<40x32xf32> -> vector<40x32xf32>
    %138 = vector.shape_cast %137 : vector<40x32xf32> to vector<4x10x32xf32>
    %139 = vector.extract_strided_slice %138 {offsets = [0, 0, 0], sizes = [4, 8, 32], strides = [1, 1, 1]} : vector<4x10x32xf32> to vector<4x8x32xf32>
    %140 = vector.shape_cast %139 : vector<4x8x32xf32> to vector<4x256xf32>
    %c12 = arith.constant 12 : index
    %c0_95 = arith.constant 0 : index
    %141 = vector.load %arg8[%c12, %c0_95] : memref<36x256xf32, #tpu.memory_space<vmem>>, vector<4x256xf32>
    tpu.vector_store %arg8[%c12, %c0_95], %140 {strides = array<i32>} : memref<36x256xf32, #tpu.memory_space<vmem>>, vector<4x256xf32>,
    %142 = vector.extract_strided_slice %138 {offsets = [0, 1, 0], sizes = [4, 8, 32], strides = [1, 1, 1]} : vector<4x10x32xf32> to vector<4x8x32xf32>
    %143 = vector.shape_cast %142 : vector<4x8x32xf32> to vector<4x256xf32>
    %c16 = arith.constant 16 : index
    %c0_96 = arith.constant 0 : index
    %144 = vector.load %arg8[%c16, %c0_96] : memref<36x256xf32, #tpu.memory_space<vmem>>, vector<4x256xf32>
    tpu.vector_store %arg8[%c16, %c0_96], %143 {strides = array<i32>} : memref<36x256xf32, #tpu.memory_space<vmem>>, vector<4x256xf32>,
    %145 = vector.extract_strided_slice %138 {offsets = [0, 2, 0], sizes = [4, 8, 32], strides = [1, 1, 1]} : vector<4x10x32xf32> to vector<4x8x32xf32>
    %146 = vector.shape_cast %145 : vector<4x8x32xf32> to vector<4x256xf32>
    %c20 = arith.constant 20 : index
    %c0_97 = arith.constant 0 : index
    %147 = vector.load %arg8[%c20, %c0_97] : memref<36x256xf32, #tpu.memory_space<vmem>>, vector<4x256xf32>
    tpu.vector_store %arg8[%c20, %c0_97], %146 {strides = array<i32>} : memref<36x256xf32, #tpu.memory_space<vmem>>, vector<4x256xf32>,
    %c2_98 = arith.constant 2 : index
    %c0_99 = arith.constant 0 : index
    %c0_100 = arith.constant 0 : index
    %148 = vector.load %arg4[%c2_98, %c0_99, %c0_100] : memref<3x16x32xf32, #tpu.memory_space<vmem>>, vector<1x16x32xf32>
    %149 = vector.shape_cast %148 : vector<1x16x32xf32> to vector<16x32xf32>
    %cst_101 = arith.constant dense<0.000000e+00> : vector<40x32xf32>
    %150 = tpu.matmul %121, %149, %cst_101 {dimension_numbers = #tpu.dot_dimension_numbers<[1], [0], [0], [1], [0, 0, 1, 1], [], []>} : vector<40x16xf32>, vector<16x32xf32>, vector<40x32xf32> -> vector<40x32xf32>
    %151 = vector.shape_cast %150 : vector<40x32xf32> to vector<4x10x32xf32>
    %152 = vector.extract_strided_slice %151 {offsets = [0, 0, 0], sizes = [4, 8, 32], strides = [1, 1, 1]} : vector<4x10x32xf32> to vector<4x8x32xf32>
    %153 = vector.shape_cast %152 : vector<4x8x32xf32> to vector<4x256xf32>
    %c24 = arith.constant 24 : index
    %c0_102 = arith.constant 0 : index
    %154 = vector.load %arg8[%c24, %c0_102] : memref<36x256xf32, #tpu.memory_space<vmem>>, vector<4x256xf32>
    tpu.vector_store %arg8[%c24, %c0_102], %153 {strides = array<i32>} : memref<36x256xf32, #tpu.memory_space<vmem>>, vector<4x256xf32>,
    %155 = vector.extract_strided_slice %151 {offsets = [0, 1, 0], sizes = [4, 8, 32], strides = [1, 1, 1]} : vector<4x10x32xf32> to vector<4x8x32xf32>
    %156 = vector.shape_cast %155 : vector<4x8x32xf32> to vector<4x256xf32>
    %c28 = arith.constant 28 : index
    %c0_103 = arith.constant 0 : index
    %157 = vector.load %arg8[%c28, %c0_103] : memref<36x256xf32, #tpu.memory_space<vmem>>, vector<4x256xf32>
    tpu.vector_store %arg8[%c28, %c0_103], %156 {strides = array<i32>} : memref<36x256xf32, #tpu.memory_space<vmem>>, vector<4x256xf32>,
    %158 = vector.extract_strided_slice %151 {offsets = [0, 2, 0], sizes = [4, 8, 32], strides = [1, 1, 1]} : vector<4x10x32xf32> to vector<4x8x32xf32>
    %159 = vector.shape_cast %158 : vector<4x8x32xf32> to vector<4x256xf32>
    %c32 = arith.constant 32 : index
    %c0_104 = arith.constant 0 : index
    %160 = vector.load %arg8[%c32, %c0_104] : memref<36x256xf32, #tpu.memory_space<vmem>>, vector<4x256xf32>
    tpu.vector_store %arg8[%c32, %c0_104], %159 {strides = array<i32>} : memref<36x256xf32, #tpu.memory_space<vmem>>, vector<4x256xf32>,
    %c0_105 = arith.constant 0 : index
    %c0_106 = arith.constant 0 : index
    %161 = vector.load %arg5[%c0_105, %c0_106] : memref<8x36xf32, #tpu.memory_space<vmem>>, vector<8x36xf32>
    %c0_107 = arith.constant 0 : index
    %c0_108 = arith.constant 0 : index
    %162 = vector.load %arg8[%c0_107, %c0_108] : memref<36x256xf32, #tpu.memory_space<vmem>>, vector<36x256xf32>
    %cst_109 = arith.constant dense<0.000000e+00> : vector<8x256xf32>
    %163 = tpu.matmul %161, %162, %cst_109 {dimension_numbers = #tpu.dot_dimension_numbers<[1], [0], [0], [1], [0, 0, 1, 1], [], []>} : vector<8x36xf32>, vector<36x256xf32>, vector<8x256xf32> -> vector<8x256xf32>
    %cst_110 = arith.constant 0.000000e+00 : f32
    %164 = vector.broadcast %cst_110 : f32 to vector<8x256xf32>
    %165 = arith.cmpf oge, %163, %164 : vector<8x256xf32>
    %cst_111 = arith.constant 1.000000e-01 : f32
    %166 = vector.broadcast %cst_111 : f32 to vector<8x256xf32>
    %167 = arith.mulf %166, %163 : vector<8x256xf32>
    %168 = arith.select %165, %163, %167 : vector<8x256xi1>, vector<8x256xf32>
    %c0_112 = arith.constant 0 : index
    %c0_113 = arith.constant 0 : index
    %c0_114 = arith.constant 0 : index
    %169 = vector.load %arg6[%c0_112, %c0_113, %c0_114] : memref<1x8x256xf32, #tpu.memory_space<vmem>>, vector<1x8x256xf32>
    %170 = vector.shape_cast %169 : vector<1x8x256xf32> to vector<8x256xf32>
    %171 = vector.shape_cast %168 : vector<8x256xf32> to vector<1x8x256xf32>
    tpu.vector_store %arg6[%c0_112, %c0_113, %c0_114], %171 {strides = array<i32>} : memref<1x8x256xf32, #tpu.memory_space<vmem>>, vector<1x8x256xf32>,
    return
  }
  func.func @transform_0(%arg0: i32, %arg1: i32, %arg2: memref<4x10xi32, #tpu.memory_space<smem>>) -> (i32, i32, i32, i32) {
    %c0_i32 = arith.constant 0 : i32
    %c0_i32_0 = arith.constant 0 : i32
    %c0_i32_1 = arith.constant 0 : i32
    %c0_i32_2 = arith.constant 0 : i32
    return %arg0, %c0_i32, %c0_i32_0, %c0_i32_1 : i32, i32, i32, i32
  }
  func.func @transform_1(%arg0: i32, %arg1: i32, %arg2: memref<4x10xi32, #tpu.memory_space<smem>>) -> (i32, i32, i32) {
    %c0_i32 = arith.constant 0 : i32
    %c0_i32_0 = arith.constant 0 : i32
    %c0_i32_1 = arith.constant 0 : i32
    %c0_i32_2 = arith.constant 0 : i32
    return %c0_i32, %c0_i32_0, %c0_i32_1 : i32, i32, i32
  }
  func.func @transform_2(%arg0: i32, %arg1: i32, %arg2: memref<4x10xi32, #tpu.memory_space<smem>>) -> (i32, i32) {
    %c0_i32 = arith.constant 0 : i32
    %c0_i32_0 = arith.constant 0 : i32
    %c0_i32_1 = arith.constant 0 : i32
    return %c0_i32, %c0_i32_0 : i32, i32
  }
  func.func @transform_3(%arg0: i32, %arg1: i32, %arg2: memref<4x10xi32, #tpu.memory_space<smem>>) -> (i32, i32, i32) {
    %c0_i32 = arith.constant 0 : i32
    %c0_i32_0 = arith.constant 0 : i32
    return %arg0, %c0_i32, %arg1 : i32, i32, i32
  }
}

</mosaic_0001>

<bundles_post_ra>
// kernel: tpu_custom_call.1
= control target key start
LH: loop header
LB: loop body
LE: loop exit
PB: predicated region body
PF: predicated region fallthrough
CT: control target
= control target key end

     0   :  { %s5220_s0 = inlined_call_operand.hbm [shape: s32[4,10], index: 0, kind: input, shape index: {}]   ;;  %s5221_s1 = inlined_call_operand.hbm [shape: f32[2,4,16,16], index: 1, kind: input, shape index: {}]   ;;  %s5222_s2 = inlined_call_operand.hbm [shape: f32[3,16,32], index: 2, kind: input, shape index: {}]   ;;  %s5223_s3 = inlined_call_operand.vmem [shape: f32[8,36], index: 3, kind: input, shape index: {}]   ;;  %s5224_s4 = inlined_call_operand.hbm [shape: f32[2,8,1024], index: 4, kind: output, shape index: {}]  }
   0x1   :  { %5286 = sst [smem:[#allocation52_spill]] %s5222_s2  ;;  %s3294_s17 = scalar_lea.hbm %s5220_s0, 64 }
   0x2   :  { %p3295_p0 = scmp.ne.s32.totalorder %s5220_s0, %s3294_s17  ;;  %p3298_p1 = scmp.lt.u32.totalorder %s3294_s17, %s5220_s0 }
   0x4   :  { %p3300_p2 = pnand %p3298_p1, %p3295_p0 }
   0x6   :  { %3303 = shalt.err (!%p3300_p2)  }
   0x7   :  { %s3492_s22 = smov [#allocation5]  }
   0x8   :  { %10 = dma.hbm_to_smem %s5220_s0, 64, %s3492_s22, [#allocation4] }
   0x9   :  { %3434 = dma.done.wait [#allocation4], 64 }
   0xa   :  { %3435 = vsyncadd [#allocation4], 4294967232 }
   0xb   :  { %12 = sfence }
   0xc   :  { %13 = vsyncpa [#allocation7], 0 }
   0xd   :  { %15 = vsyncpa [#allocation7 + $0x1], 0 }
   0xe   :  { %16 = vsyncpa [#allocation10], 0 }
   0xf   :  { %17 = vsyncpa [#allocation8], 0 }
  0x10   :  { %19 = vsyncpa [#allocation8 + $0x1], 0  ;;  %s3543_s25 = smov 0   ;;  %s3545_s26 = smov 0  }
  0x11   :  { %s3547_s27 = smov 0   ;;  %s3549_s28 = smov 0  }
  0x12   :  { %s3551_s29 = smov 0   ;;  %s3553_s30 = smov 0  }
  0x13   :  { %s3555_s0 = smov 0   ;;  %s3557_s5 = smov 0  }
  0x14   :  { %s3559_s6 = smov 0   ;;  %s3561_s7 = smov 0  }
  0x15   :  { %s3563_s8 = smov 0  }
  0x16 LB: > { %5287 = sst [smem:[#allocation16_spill]] %s3450_s25  ;;  %s2989_s9 = sadd.s32 4294967295, %s3490_s8   ;;  %s3490_s8 = sphi %s3563_s8, %s25_s8   ;;  %s3486_s7 = sphi %s3561_s7, %s5475_s7   ;;  %s3482_s6 = sphi %s3559_s6, %s5466_s6   ;;  %s3478_s5 = sphi %s3557_s5, %s5474_s5   ;;  %s3474_s0 = sphi %s3555_s0, %s5465_s0   ;;  %s3470_s30 = sphi %s3553_s30, %s5473_s30   ;;  %s3466_s29 = sphi %s3551_s29, %s5472_s29   ;;  %s3462_s28 = sphi %s3549_s28, %s5471_s28   ;;  %s3458_s27 = sphi %s3547_s27, %s5470_s27   ;;  %s3454_s26 = sphi %s3545_s26, %s5469_s26   ;;  %s3450_s25 = sphi %s3543_s25, %s5468_s25  }
  0x17   : > { %5288 = sst [smem:[#allocation17_spill]] %s3482_s6  ;;  %s2990_s10 = sadd.s32 4294967294, %s3490_s8  }
  0x18   : > { %p57_p3 = scmp.ne.s32.totalorder %s3466_s29, %s3462_s28  ;;  %p3599_p4 = scmp.eq.s32.totalorder %s2989_s9, 0 }
  0x19   : > { %s114_s12 = sadd.s32 1, %s3458_s27  ;;  %p124_p5 = scmp.ne.s32.totalorder %s3458_s27, %s3454_s26 }
  0x1a   : > { %s5289_s11 = scalar_select %p3599_p4, 1, 0 }
  0x1b   : > { %p3608_p6 = por %p3599_p4, %p57_p3  ;;  %p125_p7 = scmp.eq.s32.totalorder %s2989_s9, 7 }
  0x1c   : > { %p130_p8 = scmp.ne.s32.totalorder %s3454_s26, %s3450_s25  ;;  %p131_p9 = scmp.eq.s32.totalorder %s2990_s10, 7 }
  0x1d   : > { %s5290_s13 = scalar_select %p3608_p6, 1, 0 }
  0x1e   : > { %p3614_p10 = por %p125_p7, %p124_p5  ;;  %p2991_p11 = scmp.ge.s32.totalorder %s3490_s8, 1 }
  0x1f   : > { %p3619_p12 = por %p131_p9, %p130_p8  ;;  %p138_p13 = scmp.lt.s32.totalorder %s3490_s8, 9 }
  0x20   : > { %s5291_s14 = scalar_select %p3614_p10, 1, 0 }
  0x21   : > { %s5292_s15 = scalar_select %p3619_p12, 1, 0 }
  0x22   : > { %p3624_p0 = pnand %p2991_p11, %p138_p13  ;;  %s3493_s17 = smov [#allocation9]  }
  0x23   : > { %5293 = sst [smem:[#allocation18_spill]] %s5292_s15  ;;  %s150_s18 = sshll.u32 %s3493_s17, 4  ;;  %s151_s18 = int_to_ptr.vmem [resolvable:$true] %s150_s18 }
  0x24   : > { %s5294_s16 = scalar_select %p3624_p0, 1, 0 }
  0x25   : > { %p3175_p1 = pneg %p3624_p0  ;;  %s5296_s2 = sld [smem:[#allocation52_spill]] }
  0x27   : > { %p3632_p2 = pnand %p3175_p1, %p3599_p4 }
  0x29   : > { %p3306_p5 = pneg %p3632_p2 }
  0x2b   : > { %s3304_s22 = scalar_lea.hbm %s5296_s2, 768 }
  0x2c   : > { %p3305_p3 = scmp.ne.s32.totalorder %s5296_s2, %s3304_s22  ;;  %p3311_p9 = scmp.lt.u32.totalorder %s3304_s22, %s5296_s2 }
  0x2e   : > { %p3307_p7 = pnand %p3306_p5, %p3305_p3 }
  0x30   : > { %p3308_p8 = pneg %p3307_p7 }
  0x32   : > { %p3313_p11 = pnand %p3311_p9, %p3308_p8 }
  0x34   : > { %3316 = shalt.err (!%p3313_p11)
}
  0x35   : > { %s3317_s10 = scalar_lea.vmem %s151_s18, 768  ;;  %p3325_p10 = scmp.lt.s32.totalorder %s151_s18, %s151_s18 }
  0x36   : > { %p3318_p13 = scmp.ne.s32.totalorder %s151_s18, %s3317_s10  ;;  %p3326_p4 = scmp.lt.s32.totalorder %s3317_s10, %s3317_s10 }
  0x38   : > { %p3320_p1 = pnand %p3318_p13, %p3306_p5  ;;  %p3327_p6 = por %p3326_p4, %p3325_p10 }
  0x3a   : > { %p3321_p12 = pneg %p3320_p1 }
  0x3c   : > { %p3328_p0 = pnand %p3327_p6, %p3321_p12 }
  0x3e   : > { %3331 = shalt.err (!%p3328_p0)
}
  0x3f   : > { %s5230_s17 = smov 128   ;;  %s5231_s20 = smov 8  }
  0x40   : > { %3178 = dma.hbm_to_vmem [thread:$0]  (!%p3632_p2), %s5296_s2, 768, %s151_s18, [#allocation10], %s5230_s17, %s5230_s17, %s5231_s20  }
  0x41   : > { %s34_s23 = sadd.s32 1, %s3482_s6  ;;  %s37_s24 = sadd.s32 1, %s3486_s7 }
  0x42   : > { %p35_p4 = scmp.ge.s32.totalorder %s34_s23, 4  ;;  %s44_s28 = sadd.s32 1, %s3470_s30 }
  0x43   : > { %p51_p6 = scmp.ne.s32.totalorder %s3470_s30, %s3466_s29  ;;  %p52_p10 = scmp.eq.s32.totalorder %s3490_s8, 0 }
  0x44   : > { %s5477_s23 = smov (%p35_p4, %s34_s23), 0  ;;  %s5479_s24 = smov (!%p35_p4, %s37_s24), %s3486_s7 }
  0x45   : > { %5297 = sst [smem:[#allocation19_spill]] %s5477_s23  ;;  %s110_s19 = ssub.s32 %s3482_s6, %s5477_s23 }
  0x46   : > { %p39_p12 = scmp.ge.s32.totalorder %s5479_s24, 2  ;;  %p3188_p0 = scmp.lt.s32.totalorder %s3490_s8, 8 }
  0x47   : > { %p3667_p2 = por %p52_p10, %p51_p6  ;;  %s167_s9 = sand.u32 1, %s3470_s30  }
  0x48   : > { %s5481_s24 = smov (%p39_p12, %s5479_s24), 0  ;;  %s2994_s10 = sshll.u32 %s167_s9, 6 }
  0x49   : > { %5299 = sst [smem:[#allocation20_spill]] %s5481_s24  ;;  %s41_s21 = ssub.s32 %s3486_s7, %s5481_s24 }
  0x4a   : > { %p42_p3 = scmp.eq.s32.totalorder %s41_s21, 0  ;;  %s111_s22 = sor.u32 %s110_s19, %s41_s21 }
  0x4b   : > { %p112_p5 = scmp.eq.s32.totalorder %s111_s22, 0  ;;  %s3069_s17 = sshll.u32 %s3486_s7, 10 }
  0x4c   : > { %s3678_s20 = scalar_select %p42_p3, %s3470_s30, %s44_s28  }
  0x4d   : > { %s3683_s2 = scalar_select %p112_p5, %s3458_s27, %s114_s12  }
  0x4e   : > { %s3688_s15 = scalar_lea.hbm %s5221_s1, %s3069_s17  ;;  %s171_s25 = scalar_lea.vmem [#allocation6], %s2994_s10 }
  0x4f   : > { %s178_s24 = sshll.u32 %s171_s25, 4  ;;  %p3696_p7 = pnand %p3188_p0, %p3667_p2  ;;  %s3690_s24 = int_to_ptr.vmem [resolvable:$true] %s178_s24 }
  0x50   : > { %s3700_s12 = scalar_lea.sflag [#allocation7], %s167_s9  ;;  %s3332_s6 = scalar_lea.hbm %s3688_s15, 1024 }
  0x51   : > { %p3333_p8 = scmp.ne.s32.totalorder %s3688_s15, %s3332_s6  ;;  %p3334_p9 = pneg %p3696_p7 }
  0x52   : > { %s3337_s23 = scalar_lea.hbm %s5221_s1, 2048  ;;  %p3338_p1 = scmp.lt.u32.totalorder %s3688_s15, %s5221_s1 }
  0x53   : > { %p3335_p11 = pnand %p3334_p9, %p3333_p8  ;;  %p3339_p4 = scmp.lt.u32.totalorder %s3337_s23, %s3332_s6 }
  0x54   : > { %p3341_p10 = scmp.lt.u32.totalorder %s3332_s6, %s3688_s15 }
  0x55   : > { %p3336_p13 = pneg %p3335_p11  ;;  %p3340_p6 = por %p3339_p4, %p3338_p1 }
  0x57   : > { %p3342_p12 = por %p3341_p10, %p3340_p6 }
  0x59   : > { %p3343_p0 = pnand %p3342_p12, %p3336_p13 }
  0x5b   : > { %3346 = shalt.err (!%p3343_p0)
}
  0x5c   : > { %s3347_s9 = scalar_lea.vmem %s3690_s24, 1024  ;;  %s3496_s10 = smov [#allocation6]  }
  0x5d   : > { %p3348_p2 = scmp.ne.s32.totalorder %s3690_s24, %s3347_s9  ;;  %s3352_s21 = sshll.u32 %s3496_s10, 4  ;;  %s3353_s21 = int_to_ptr.vmem [resolvable:$false] %s3352_s21 }
  0x5e   : > { %s3354_s22 = scalar_lea.vmem %s3353_s21, 2048  ;;  %p3355_p8 = scmp.lt.s32.totalorder %s3690_s24, %s3353_s21 }
  0x5f   : > { %p3350_p3 = pnand %p3348_p2, %p3334_p9  ;;  %p3356_p11 = scmp.lt.s32.totalorder %s3354_s22, %s3347_s9 }
  0x61   : > { %p3351_p5 = pneg %p3350_p3  ;;  %p3357_p1 = por %p3356_p11, %p3355_p8 }
  0x63   : > { %p3358_p4 = pnand %p3357_p1, %p3351_p5 }
  0x65   : > { %3361 = shalt.err (!%p3358_p4)
}
  0x66   : > { %s5301_s6 = smov 8   ;;  %s5302_s25 = smov 128  }
  0x67   : > { %3182 = dma.hbm_to_vmem [thread:$0]  (!%p3696_p7), %s3688_s15, 1024, %s3690_s24, %s3700_s12, %s5302_s25, %s5302_s25, %s5301_s6  }
  0x68   : > { %p5303_p9 = scmp.ne.s32.totalorder %s5294_s16, 0 }
  0x6a   : > { %190 = sbr.rel (%p5303_p9) target bundleno = 914 (0x392), region = 32 }
  0x71   : > { %s192_s17 = sand.u32 1, %s3466_s29   ;;  %p5304_p13 = scmp.ne.s32.totalorder %s5290_s13, 0 }
  0x72   : > { %s2998_s23 = sshll.u32 %s192_s17, 6  ;;  %s193_s19 = scalar_lea.sflag [#allocation7], %s192_s17 }
  0x73   : > { %s3734_s18 = scalar_lea.vmem [#allocation6], %s2998_s23 }
  0x74   : > { %3437 = dma.done.wait (%p5304_p13), %s193_s19, 1024  }
  0x75   : > { %3439 = vsyncadd (%p5304_p13), %s193_s19, 4294966272  ;;  %p5305_p6 = scmp.ne.s32.totalorder %s5289_s11, 0 }
  0x77   : > { %3441 = dma.done.wait (%p5305_p6), [#allocation10], 768  }
  0x78   : > { %3443 = vsyncadd (%p5305_p6), [#allocation10], 4294966528  ;;  %s3745_s15 = sshll.u32 %s3474_s0, 7  ;;  %v3497_v0 = vmov 0.0|0.0   ;;  %vm3498_vm0 = vmmov 0   ;;  %v3499_v1 = vmov 0.0  }
  0x79   : > { %3148 = vmatprep.subr.bf16.mxu0 %v3497_v0  ;;  %3165 = vmatprep.subr.bf16.mxu1 %v3497_v0  ;;  %s225_s13 = sld [smem:[#allocation5 + %s3745_s15]]  ;;  %s246_s16 = sadd.s32 1, %s3745_s15  ;;  %v547_v2 = vld [vmem:[#allocation9] sm:$0xff]  ;;  %v548_v3 = vld [vmem:[#allocation9 + $0x8] sm:$0xff]  ;;  %vm241_vm1 = vcmask 122880   ;;  %vm634_vm2 = vcmask 130048  }
  0x7a   : > { %3095 = vmatprep.mubr.msk.f32.mxu0 %vm3498_vm0, %v3499_v1  ;;  %3104 = vmatprep.mubr.msk.f32.mxu1 %vm3498_vm0, %v3499_v1  ;;  %s3753_s11 = sld [smem:[#allocation5 + %s246_s16]]  ;;  %s267_s24 = sadd.s32 2, %s3745_s15  ;;  %v3149_v4 = vpack.c.bf16 %v548_v3, %v547_v2  ;;  %vm1028_vm3 = vcmask 1040384   ;;  %vm1029_vm4 = vcmask 1042434   ;;  %vm1031_vm6 = vcmask 1044484  }
  0x7b   : > { %s3756_s28 = sld [smem:[#allocation5 + %s267_s24]]  ;;  %s288_s12 = sadd.s32 3, %s3745_s15  ;;  %vm1030_vm5 = vmor %vm1028_vm3, %vm1029_vm4  ;;  %vm1033_vm8 = vcmask 1046534   ;;  %vm1017_vm10 = vcmask 261120   ;;  %vm1019_vm11 = vcmask 523264   ;;  %vm1021_vm12 = vcmask 785408  }
  0x7c   : > { %s3759_s9 = sld [smem:[#allocation5 + %s288_s12]]  ;;  %s309_s10 = sadd.s32 4, %s3745_s15  ;;  %3150 = vmatpush3.bf16.msra.mxu0 %v3149_v4  ;;  %3166 = vmatpush3.bf16.msra.mxu1 %v3149_v4  ;;  %vm1032_vm7 = vmor %vm1030_vm5, %vm1031_vm6  ;;  %vm2782_vm13 = vcmask 1043456   ;;  %vm2778_vm14 = vcmask 293888  }
  0x7d   : > { %s3762_s21 = sld [smem:[#allocation5 + %s309_s10]]  ;;  %s330_s22 = sadd.s32 5, %s3745_s15  ;;  %3151 = vmatprep.subr.bf16.mxu1 %v3497_v0  ;;  %3154 = vmatprep.subr.bf16.mxu0 %v3497_v0  ;;  %vm3981_vm9 = vmor %vm1032_vm7, %vm1033_vm8 }
  0x7e   : > { %s3765_s6 = sld [smem:[#allocation5 + %s330_s22]]  ;;  %s351_s25 = sadd.s32 6, %s3745_s15 }
  0x7f   : > { %p226_p7 = scmp.gt.s32.totalorder %s225_s13, 0  ;;  %p233_p10 = scmp.ge.s32.totalorder %s225_s13, 0 }
  0x80   : > { %p248_p12 = scmp.gt.s32.totalorder %s3753_s11, 0  ;;  %p255_p0 = scmp.ge.s32.totalorder %s3753_s11, 0 }
  0x81   : > { %s5483_s13 = smov (!%p226_p7, %s225_s13), 0  ;;  %p269_p2 = scmp.gt.s32.totalorder %s3756_s28, 0 }
  0x82   : > { %s234_s17 = scalar_select %p233_p10, 1, 0 }
  0x83   : > { %s228_s23 = scalar_lea.vmem %s3734_s18, %s5483_s13 [#allocation6]  ;;  %p276_p3 = scmp.ge.s32.totalorder %s3756_s28, 0 }
  0x84   : > { %v229_v5 = vld [vmem:[%s228_s23] sm:$0x1]  ;;  %s235_s19 = scvt.s32.f32 %s234_s17  ;;  %v232_v7 = vld [vmem:[%s228_s23 + $0x30] sm:$0x1]  ;;  %p290_p5 = scmp.gt.s32.totalorder %s3759_s9, 0 }
  0x85   : > { %v231_v6 = vld [vmem:[%s228_s23 + $0x20] sm:$0x1]  ;;  %s249_s16 = scalar_select %p248_p12, %s3753_s11, 0  ;;  %v230_v8 = vld [vmem:[%s228_s23 + $0x10] sm:$0x1] }
  0x86   : > { %v236_v9 = vstv %s235_s19  ;;  %s256_s24 = scalar_select %p255_p0, 1, 0 }
  0x87   : > { %v237_v10 = vmul.f32 %v236_v9, %v229_v5  ;;  %s250_s13 = scalar_lea.vmem %s3734_s18, %s249_s16 [#allocation6]  ;;  %v239_v11 = vmul.f32 %v236_v9, %v231_v6  ;;  %v240_v12 = vmul.f32 %v236_v9, %v232_v7  ;;  %v238_v13 = vmul.f32 %v236_v9, %v230_v8  ;;  %p297_p8 = scmp.ge.s32.totalorder %s3759_s9, 0 }
  0x88   : > { %v251_v14 = vld [vmem:[%s250_s13] sm:$0x1]  ;;  %s257_s12 = scvt.s32.f32 %s256_s24  ;;  %v254_v16 = vld [vmem:[%s250_s13 + $0x30] sm:$0x1]  ;;  %p311_p11 = scmp.gt.s32.totalorder %s3762_s21, 0 }
  0x89   : > { %v253_v15 = vld [vmem:[%s250_s13 + $0x20] sm:$0x1]  ;;  %242 = vst.msk [vmem:[#allocation2] sm:$0x1] %vm241_vm1, %v237_v10  ;;  %s270_s10 = scalar_select %p269_p2, %s3756_s28, 0  ;;  %v455_v10 = vlaneseq }
  0x8a   : > { %244 = vst.msk [vmem:[#allocation2 + $0x20] sm:$0x1] %vm241_vm1, %v239_v11  ;;  %245 = vst.msk [vmem:[#allocation2 + $0x30] sm:$0x1] %vm241_vm1, %v240_v12  ;;  %v252_v17 = vld [vmem:[%s250_s13 + $0x10] sm:$0x1]  ;;  %v258_v18 = vstv %s257_s12 }
  0x8b   : > { %243 = vst.msk [vmem:[#allocation2 + $0x10] sm:$0x1] %vm241_vm1, %v238_v13  ;;  %s277_s11 = scalar_select %p276_p3, 1, 0  ;;  %v259_v19 = vmul.f32 %v258_v18, %v251_v14  ;;  %v261_v20 = vmul.f32 %v258_v18, %v253_v15  ;;  %v262_v21 = vmul.f32 %v258_v18, %v254_v16  ;;  %v260_v22 = vmul.f32 %v258_v18, %v252_v17 }
  0x8c   : > { %s271_s22 = scalar_lea.vmem %s3734_s18, %s270_s10 [#allocation6]  ;;  %p318_p1 = scmp.ge.s32.totalorder %s3762_s21, 0  ;;  %v3500_v8 = vmov 1983009808   ;;  %v3857_v18 = vshrl.u32 %v455_v10, 7 }
  0x8d   : > { %v272_v23 = vld [vmem:[%s271_s22] sm:$0x1]  ;;  %s278_s17 = scvt.s32.f32 %s277_s11  ;;  %263 = vst.msk [vmem:[#allocation2 + $0x1] sm:$0x1] %vm241_vm1, %v259_v19  ;;  %265 = vst.msk [vmem:[#allocation2 + $0x21] sm:$0x1] %vm241_vm1, %v261_v20  ;;  %v453_v9 = vunpack.c.l.s4 %v3500_v8 }
  0x8e   : > { %v274_v24 = vld [vmem:[%s271_s22 + $0x20] sm:$0x1]  ;;  %s291_s23 = scalar_select %p290_p5, %s3759_s9, 0  ;;  %266 = vst.msk [vmem:[#allocation2 + $0x31] sm:$0x1] %vm241_vm1, %v262_v21 }
  0x8f   : > { %v275_v25 = vld [vmem:[%s271_s22 + $0x30] sm:$0x1]  ;;  %264 = vst.msk [vmem:[#allocation2 + $0x11] sm:$0x1] %vm241_vm1, %v260_v22  ;;  %v279_v27 = vstv %s278_s17  ;;  %s298_s28 = scalar_select %p297_p8, 1, 0  ;;  %v454_v17 = vunpack.c.0.s8 %v453_v9 }
  0x90   : > { %v273_v26 = vld [vmem:[%s271_s22 + $0x10] sm:$0x1]  ;;  %v280_v28 = vmul.f32 %v279_v27, %v272_v23  ;;  %s292_s19 = scalar_lea.vmem %s3734_s18, %s291_s23 [#allocation6]  ;;  %p332_p4 = scmp.gt.s32.totalorder %s3765_s6, 0  ;;  %v282_v29 = vmul.f32 %v279_v27, %v274_v24  ;;  %v283_v30 = vmul.f32 %v279_v27, %v275_v25 }
  0x91   : > { %v281_v31 = vmul.f32 %v279_v27, %v273_v26  ;;  %v293_v32 = vld [vmem:[%s292_s19] sm:$0x1]  ;;  %s299_s16 = scvt.s32.f32 %s298_s28  ;;  %p339_p9 = scmp.ge.s32.totalorder %s3765_s6, 0  ;;  %v296_v34 = vld [vmem:[%s292_s19 + $0x30] sm:$0x1]  ;;  %v3863_v19 = vsub.s32 %v454_v17, %v3857_v18 }
  0x92   : > { %v295_v33 = vld [vmem:[%s292_s19 + $0x20] sm:$0x1]  ;;  %284 = vst.msk [vmem:[#allocation2 + $0x2] sm:$0x1] %vm241_vm1, %v280_v28  ;;  %s312_s24 = scalar_select %p311_p11, %s3762_s21, 0 }
  0x93   : > { %286 = vst.msk [vmem:[#allocation2 + $0x22] sm:$0x1] %vm241_vm1, %v282_v29  ;;  %287 = vst.msk [vmem:[#allocation2 + $0x32] sm:$0x1] %vm241_vm1, %v283_v30  ;;  %v294_v35 = vld [vmem:[%s292_s19 + $0x10] sm:$0x1]  ;;  %v300_v36 = vstv %s299_s16 }
  0x94   : > { %285 = vst.msk [vmem:[#allocation2 + $0x12] sm:$0x1] %vm241_vm1, %v281_v31  ;;  %s319_s9 = scalar_select %p318_p1, 1, 0  ;;  %v301_v37 = vmul.f32 %v300_v36, %v293_v32  ;;  %v303_v38 = vmul.f32 %v300_v36, %v295_v33  ;;  %v304_v39 = vmul.f32 %v300_v36, %v296_v34  ;;  %v302_v40 = vmul.f32 %v300_v36, %v294_v35 }
  0x95   : > { %s313_s13 = scalar_lea.vmem %s3734_s18, %s312_s24 [#allocation6]  ;;  %s3817_s12 = sld [smem:[#allocation5 + %s351_s25]] }
  0x96   : > { %v314_v41 = vld [vmem:[%s313_s13] sm:$0x1]  ;;  %s320_s10 = scvt.s32.f32 %s319_s9  ;;  %s372_s11 = sadd.s32 7, %s3745_s15  ;;  %305 = vst.msk [vmem:[#allocation2 + $0x3] sm:$0x1] %vm241_vm1, %v301_v37 }
  0x97   : > { %v316_v42 = vld [vmem:[%s313_s13 + $0x20] sm:$0x1]  ;;  %s333_s22 = scalar_select %p332_p4, %s3765_s6, 0  ;;  %307 = vst.msk [vmem:[#allocation2 + $0x23] sm:$0x1] %vm241_vm1, %v303_v38 }
  0x98   : > { %308 = vst.msk [vmem:[#allocation2 + $0x33] sm:$0x1] %vm241_vm1, %v304_v39  ;;  %v317_v43 = vld [vmem:[%s313_s13 + $0x30] sm:$0x1]  ;;  %306 = vst.msk [vmem:[#allocation2 + $0x13] sm:$0x1] %vm241_vm1, %v302_v40  ;;  %v321_v45 = vstv %s320_s10 }
  0x99   : > { %v315_v44 = vld [vmem:[%s313_s13 + $0x10] sm:$0x1]  ;;  %s340_s21 = scalar_select %p339_p9, 1, 0  ;;  %v322_v46 = vmul.f32 %v321_v45, %v314_v41  ;;  %v324_v47 = vmul.f32 %v321_v45, %v316_v42  ;;  %v325_v48 = vmul.f32 %v321_v45, %v317_v43 }
  0x9a   : > { %s334_s25 = scalar_lea.vmem %s3734_s18, %s333_s22 [#allocation6]  ;;  %s3830_s17 = sld [smem:[#allocation5 + %s372_s11]]  ;;  %v323_v49 = vmul.f32 %v321_v45, %v315_v44 }
  0x9b   : > { %v335_v50 = vld [vmem:[%s334_s25] sm:$0x1]  ;;  %s341_s23 = scvt.s32.f32 %s340_s21  ;;  %v338_v52 = vld [vmem:[%s334_s25 + $0x30] sm:$0x1]  ;;  %326 = vst.msk [vmem:[#allocation2 + $0x4] sm:$0x1] %vm241_vm1, %v322_v46 }
  0x9c   : > { %v337_v51 = vld [vmem:[%s334_s25 + $0x20] sm:$0x1]  ;;  %p353_p13 = scmp.gt.s32.totalorder %s3817_s12, 0  ;;  %p360_p6 = scmp.ge.s32.totalorder %s3817_s12, 0  ;;  %328 = vst.msk [vmem:[#allocation2 + $0x24] sm:$0x1] %vm241_vm1, %v324_v47 }
  0x9d   : > { %329 = vst.msk [vmem:[#allocation2 + $0x34] sm:$0x1] %vm241_vm1, %v325_v48  ;;  %327 = vst.msk [vmem:[#allocation2 + $0x14] sm:$0x1] %vm241_vm1, %v323_v49  ;;  %v336_v53 = vld [vmem:[%s334_s25 + $0x10] sm:$0x1]  ;;  %v342_v54 = vstv %s341_s23 }
  0x9e   : > { %s393_s6 = sadd.s32 8, %s3745_s15  ;;  %s414_s28 = sadd.s32 9, %s3745_s15  ;;  %v343_v55 = vmul.f32 %v342_v54, %v335_v50  ;;  %v345_v56 = vmul.f32 %v342_v54, %v337_v51  ;;  %v346_v57 = vmul.f32 %v342_v54, %v338_v52  ;;  %v344_v58 = vmul.f32 %v342_v54, %v336_v53 }
  0x9f   : > { %s5485_s12 = smov (!%p353_p13, %s3817_s12), 0  ;;  %s415_s11 = sld [smem:[#allocation5 + %s414_s28]] }
  0xa0   : > { %s361_s19 = scalar_select %p360_p6, 1, 0  ;;  %347 = vst.msk [vmem:[#allocation2 + $0x5] sm:$0x1] %vm241_vm1, %v343_v55  ;;  %349 = vst.msk [vmem:[#allocation2 + $0x25] sm:$0x1] %vm241_vm1, %v345_v56 }
  0xa1   : > { %s355_s16 = scalar_lea.vmem %s3734_s18, %s5485_s12 [#allocation6]  ;;  %p374_p7 = scmp.gt.s32.totalorder %s3830_s17, 0  ;;  %350 = vst.msk [vmem:[#allocation2 + $0x35] sm:$0x1] %vm241_vm1, %v346_v57  ;;  %348 = vst.msk [vmem:[#allocation2 + $0x15] sm:$0x1] %vm241_vm1, %v344_v58  ;;  %v2065_v55 = vld [vmem:[#allocation9 + $0x20] sm:$0xff] }
  0xa2   : > { %v356_v59 = vld [vmem:[%s355_s16] sm:$0x1]  ;;  %s362_s24 = scvt.s32.f32 %s361_s19  ;;  %p381_p10 = scmp.ge.s32.totalorder %s3830_s17, 0  ;;  %v359_v61 = vld [vmem:[%s355_s16 + $0x30] sm:$0x1] }
  0xa3   : > { %v358_v60 = vld [vmem:[%s355_s16 + $0x20] sm:$0x1]  ;;  %s5487_s17 = smov (!%p374_p7, %s3830_s17), 0  ;;  %v357_v62 = vld [vmem:[%s355_s16 + $0x10] sm:$0x1]  ;;  %s394_s12 = sld [smem:[#allocation5 + %s393_s6]] }
  0xa4   : > { %v363_v63 = vstv %s362_s24  ;;  %s382_s9 = scalar_select %p381_p10, 1, 0  ;;  %v2066_v56 = vld [vmem:[#allocation9 + $0x28] sm:$0xff] }
  0xa5   : > { %v364_v0 = vmul.f32 %v363_v63, %v356_v59  ;;  %s376_s13 = scalar_lea.vmem %s3734_s18, %s5487_s17 [#allocation6]  ;;  %v366_v2 = vmul.f32 %v363_v63, %v358_v60  ;;  %v367_v3 = vmul.f32 %v363_v63, %v359_v61  ;;  %v365_v4 = vmul.f32 %v363_v63, %v357_v62  ;;  %p416_p2 = scmp.gt.s32.totalorder %s415_s11, 0 }
  0xa6   : > { %v377_v5 = vld [vmem:[%s376_s13] sm:$0x1]  ;;  %s383_s10 = scvt.s32.f32 %s382_s9  ;;  %v380_v7 = vld [vmem:[%s376_s13 + $0x30] sm:$0x1]  ;;  %p423_p3 = scmp.ge.s32.totalorder %s415_s11, 0 }
  0xa7   : > { %v379_v6 = vld [vmem:[%s376_s13 + $0x20] sm:$0x1]  ;;  %368 = vst.msk [vmem:[#allocation2 + $0x6] sm:$0x1] %vm241_vm1, %v364_v0  ;;  %370 = vst.msk [vmem:[#allocation2 + $0x26] sm:$0x1] %vm241_vm1, %v366_v2  ;;  %v3155_v2 = vpack.c.bf16 %v2066_v56, %v2065_v55 }
  0xa8   : > { %371 = vst.msk [vmem:[#allocation2 + $0x36] sm:$0x1] %vm241_vm1, %v367_v3  ;;  %369 = vst.msk [vmem:[#allocation2 + $0x16] sm:$0x1] %vm241_vm1, %v365_v4  ;;  %v378_v11 = vld [vmem:[%s376_s13 + $0x10] sm:$0x1]  ;;  %v384_v12 = vstv %s383_s10 }
  0xa9   : > { %v385_v13 = vmul.f32 %v384_v12, %v377_v5  ;;  %v387_v14 = vmul.f32 %v384_v12, %v379_v6  ;;  %v388_v15 = vmul.f32 %v384_v12, %v380_v7  ;;  %v386_v16 = vmul.f32 %v384_v12, %v378_v11  ;;  %p395_p12 = scmp.gt.s32.totalorder %s394_s12, 0  ;;  %p402_p0 = scmp.ge.s32.totalorder %s394_s12, 0 }
  0xaa   : > { %s5491_s11 = smov (!%p416_p2, %s415_s11), 0  ;;  %s3503_s6 = smov 64  }
  0xab   : > { %389 = vst.msk [vmem:[#allocation2 + $0x7] sm:$0x1] %vm241_vm1, %v385_v13  ;;  %391 = vst.msk [vmem:[#allocation2 + $0x27] sm:$0x1] %vm241_vm1, %v387_v14  ;;  %s5489_s12 = smov (!%p395_p12, %s394_s12), 0  ;;  %s418_s17 = scalar_lea.vmem %s3734_s18, %s5491_s11 [#allocation6] }
  0xac   : > { %392 = vst.msk [vmem:[#allocation2 + $0x37] sm:$0x1] %vm241_vm1, %v388_v15  ;;  %390 = vst.msk [vmem:[#allocation2 + $0x17] sm:$0x1] %vm241_vm1, %v386_v16  ;;  %s403_s15 = scalar_select %p402_p0, 1, 0 }
  0xad   : > { %s3866_s22 = scalar_lea.vmem %s3734_s18, %s5489_s12 [#allocation6]  ;;  %v421_v31 = vld [vmem:[%s418_s17 + $0x20] sm:$0x1]  ;;  %v422_v39 = vld [vmem:[%s418_s17 + $0x30] sm:$0x1]  ;;  %s3502_s18 = smov 32  }
  0xae   : > { %v400_v20 = vld [vmem:[%s3866_s22 + $0x20] sm:$0x1]  ;;  %s404_s21 = scvt.s32.f32 %s403_s15  ;;  %v401_v25 = vld [vmem:[%s3866_s22 + $0x30] sm:$0x1]  ;;  %s3504_s28 = smov 96  }
  0xaf   : > { %v398_v21 = vld [vmem:[%s3866_s22] sm:$0x1]  ;;  %s424_s25 = scalar_select %p423_p3, 1, 0  ;;  %v399_v47 = vld [vmem:[%s3866_s22 + $0x10] sm:$0x1] }
  0xb0   : > { %v405_v23 = vstv %s404_s21  ;;  %v419_v37 = vld [vmem:[%s418_s17] sm:$0x1]  ;;  %v420_v48 = vld [vmem:[%s418_s17 + $0x10] sm:$0x1]  ;;  %s220_s24 = sand.u32 1, %s3454_s26   ;;  %s3064_s13 = sshll.u32 %s3474_s0, 1 }
  0xb1   : > { %v408_v28 = vmul.f32 %v405_v23, %v400_v20  ;;  %s425_s23 = scvt.s32.f32 %s424_s25  ;;  %v406_v33 = vmul.f32 %v405_v23, %v398_v21  ;;  %v409_v38 = vmul.f32 %v405_v23, %v401_v25  ;;  %v407_v59 = vmul.f32 %v405_v23, %v399_v47  ;;  %v1356_v20 = vld [vmem:[#allocation9 + $0x10] sm:$0xff]  ;;  %v1357_v21 = vld [vmem:[#allocation9 + $0x18] sm:$0xff]  ;;  %s3000_s9 = sshll.u32 %s220_s24, 4 }
  0xb2   : > { %v435_v22 = vld [vmem:[#allocation2] sm:$0xff]  ;;  %s3065_s12 = sshll.u32 %s3478_s5, 3  ;;  %s222_s15 = scalar_lea.vmem [#allocation11], %s3000_s9 }
  0xb3   : > { %v439_v24 = vld [vmem:[#allocation2 + $0x20] sm:$0xff]  ;;  %v451_v26 = vcombine.high %v435_v22, %v435_v22  ;;  %v458_v27 = vrot.slane %v435_v22, %v3863_v19  ;;  %v437_v30 = vld [vmem:[#allocation2 + $0x10] sm:$0xff]  ;;  %412 = vst.msk [vmem:[#allocation2 + $0x28] sm:$0x1] %vm241_vm1, %v408_v28  ;;  %v426_v40 = vstv %s425_s23  ;;  %410 = vst.msk [vmem:[#allocation2 + $0x8] sm:$0x1] %vm241_vm1, %v406_v33  ;;  %s2881_s10 = sadd.s32 %s3065_s12, %s3064_s13 }
  0xb4   : > { %v499_v29 = vcombine.high %v439_v24, %v439_v24  ;;  %v441_v32 = vld [vmem:[#allocation2 + $0x30] sm:$0xff]  ;;  %v475_v41 = vcombine.high %v437_v30, %v437_v30  ;;  %v482_v42 = vrot.slane %v437_v30, %v3863_v19  ;;  %v429_v45 = vmul.f32 %v426_v40, %v421_v31  ;;  %413 = vst.msk [vmem:[#allocation2 + $0x38] sm:$0x1] %vm241_vm1, %v409_v38  ;;  %s3066_s11 = sshll.u32 %s2881_s10, 7  ;;  %s2885_s22 = sshll.u32 %s222_s15, 4  ;;  %s5160_s22 = int_to_ptr.vmem [resolvable:$true] %s2885_s22 }
  0xb5   : > { %v465_v34 = vrot.slane %v451_v26, %v3863_v19  ;;  %v466_v35 = vcombine.high %v458_v27, %v458_v27  ;;  %v523_v46 = vcombine.high %v441_v32, %v441_v32  ;;  %v427_v49 = vmul.f32 %v426_v40, %v419_v37  ;;  %411 = vst.msk [vmem:[#allocation2 + $0x18] sm:$0x1] %vm241_vm1, %v407_v59  ;;  %s5158_s17 = scalar_lea.hbm %s5224_s4, %s3066_s11  ;;  %s2869_s0 = scalar_lea.sflag [#allocation8], %s220_s24 }
  0xb6   : > { %v513_v36 = vrot.slane %v499_v29, %v3863_v19  ;;  %v430_v50 = vmul.f32 %v426_v40, %v422_v39  ;;  %433 = vst.msk [vmem:[#allocation2 + $0x29] sm:$0x1] %vm241_vm1, %v429_v45  ;;  %v530_v54 = vrot.slane %v441_v32, %v3863_v19  ;;  %v489_v57 = vrot.slane %v475_v41, %v3863_v19  ;;  %s3362_s5 = scalar_lea.vmem %s5160_s22, 256  ;;  %p5461_p8 = scmp.ne.s32.totalorder %s5291_s14, 0 }
  0xb7   : > { %v467_v43 = vcombine.high %v465_v34, %v465_v34  ;;  %v549_v44 = vcombine.low %v458_v27, %v466_v35  ;;  %431 = vst.msk [vmem:[#allocation2 + $0x9] sm:$0x1] %vm241_vm1, %v427_v49  ;;  %v490_v58 = vcombine.high %v482_v42, %v482_v42  ;;  %v428_v60 = vmul.f32 %v426_v40, %v420_v48  ;;  %p3363_p5 = scmp.ne.s32.totalorder %s5160_s22, %s3362_s5  ;;  %s3505_s23 = smov [#allocation11]  }
  0xb8   : > { %v515_v53 = vcombine.high %v513_v36, %v513_v36  ;;  %434 = vst.msk [vmem:[#allocation2 + $0x39] sm:$0x1] %vm241_vm1, %v430_v50  ;;  %v537_v62 = vrot.slane %v523_v46, %v3863_v19  ;;  %v538_v63 = vcombine.high %v530_v54, %v530_v54  ;;  %v506_v0 = vrot.slane %v439_v24, %v3863_v19 }
  0xb9   : > { %v550_v51 = vcombine.low %v465_v34, %v467_v43  ;;  %v557_v52 = vrot.slane %v549_v44, %v3863_v19  ;;  %432 = vst.msk [vmem:[#allocation2 + $0x19] sm:$0x1] %vm241_vm1, %v428_v60  ;;  %v567_v5 = vcombine.low %v490_v58, %v489_v57  ;;  %v491_v10 = vcombine.high %v489_v57, %v489_v57  ;;  %p3364_p11 = pnand %p3363_p5, %p5461_p8 }
  0xba   : > { %v600_v4 = vcombine.low %v513_v36, %v515_v53  ;;  %v514_v6 = vcombine.high %v506_v0, %v506_v0  ;;  %v539_v7 = vcombine.high %v537_v62, %v537_v62  ;;  %v617_v8 = vcombine.low %v538_v63, %v537_v62 }
  0xbb   : > { %v564_v61 = vrot.slane %v550_v51, %v3863_v19  ;;  %v581_v16 = vrot.slane %v567_v5, %v3863_v19  ;;  %v3152_v31 = vpack.c.bf16 %v1357_v21, %v1356_v20  ;;  %v3501_v41 = vmov 1934713408   ;;  %p3365_p1 = pneg %p3364_p11 }
  0xbc   : > { %v584_v11 = vcombine.low %v506_v0, %v514_v6  ;;  %v608_v13 = vrot.slane %v600_v4, %v3863_v19  ;;  %v625_v24 = vrot.slane %v617_v8, %v3863_v19 }
  0xbd   : > { %v565_v3 = vcombine.low %v557_v52, %v564_v61  ;;  %v3004_v9 = vld.sshfl [vmem:[#allocation2 + $0x28] sm:$0x3 pattern:$0x76325410] }
  0xbe   : > { %v601_v12 = vcombine.low %v3004_v9, %v530_v54  ;;  %v3002_v14 = vld.sshfl [vmem:[#allocation2 + $0x8] sm:$0x3 pattern:$0x76325410]  ;;  %v598_v28 = vrot.slane %v584_v11, %v3863_v19 }
  0xbf   : > { %3096 = vmatmul.mubr.msk.f32.vlgmr.msra.gmra.mrb[0].mxu0 %vm634_vm2, %v565_v3  ;;  %v566_v15 = vcombine.low %v3002_v14, %v482_v42  ;;  %v3005_v17 = vld.sshfl [vmem:[#allocation2 + $0x38] sm:$0x3 pattern:$0x76325410]  ;;  %v847_v42 = vunpack.c.l.s4 %v3501_v41 }
  0xc0   : > { %3098 = vmatprep.mubr.msk.f32.mxu0 %vm3498_vm0, %v3499_v1  ;;  %3156 = vmatpush3.bf16.msra.mxu0 %v3155_v2  ;;  %v615_v22 = vrot.slane %v601_v12, %v3863_v19  ;;  %v618_v23 = vcombine.low %v539_v7, %v3005_v17  ;;  %v3003_v25 = vld.sshfl [vmem:[#allocation2 + $0x18] sm:$0x3 pattern:$0x76325410] }
  0xc1   : > { %v574_v26 = vrot.slane %v566_v15, %v3863_v19  ;;  %v583_v27 = vcombine.low %v491_v10, %v3003_v25  ;;  %v848_v49 = vunpack.c.0.s8 %v847_v42 }
  0xc2   : > { %v616_v29 = vcombine.low %v608_v13, %v615_v22  ;;  %v632_v30 = vrot.slane %v618_v23, %v3863_v19 }
  0xc3   : > { %v582_v32 = vcombine.low %v574_v26, %v581_v16  ;;  %v591_v33 = vrot.slane %v583_v27, %v3863_v19  ;;  %v3979_v0 = vsub.s32 %v848_v49, %v3857_v18 }
  0xc4   : > { %3105 = vmatmul.mubr.msk.f32.vlgmr.msra.gmra.mrb[0].mxu1 %vm634_vm2, %v616_v29  ;;  %v633_v34 = vcombine.low %v625_v24, %v632_v30 }
  0xc5   : > { %3107 = vmatprep.mubr.msk.f32.mxu1 %vm3498_vm0, %v3499_v1  ;;  %3099 = vmatmul.mubr.msk.f32.gmra.mrb[2].mxu0 %vm634_vm2, %v582_v32  ;;  %v599_v35 = vcombine.low %v591_v33, %v598_v28 }
  0xc6   : > { %3101 = vmatprep.mubr.msk.f32.mxu0 %vm3498_vm0, %v3499_v1  ;;  %3153 = vmatpush3.bf16.msra.mxu1 %v3152_v31 }
  0xc8   : > { %3108 = vmatmul.mubr.msk.f32.gmra.mrb[2].mxu1 %vm634_vm2, %v633_v34 }
  0xc9   : > { %3102 = vmatmul.mubr.msk.f32.gmra.mrb[4].mxu0 %vm634_vm2, %v599_v35  ;;  %3114 = vmatprep.mubr.msk.f32.mxu1 %vm3498_vm0, %v3499_v1 }
  0xca   : > { %3133 = vmatprep.mubr.msk.f32.mxu0 %vm3498_vm0, %v3499_v1 }
  0xcc   : > { %3115 = vmatmul.mubr.msk.f32.vlgmr.msra.gmra.mrb[4].mxu1 %vm634_vm2, %v565_v3 }
  0xcd   : > { %3117 = vmatprep.mubr.msk.f32.mxu1 %vm3498_vm0, %v3499_v1  ;;  %3134 = vmatmul.mubr.msk.f32.vlgmr.msra.gmra.mrb[6].mxu0 %vm634_vm2, %v565_v3 }
  0xce   : > { %3136 = vmatprep.mubr.msk.f32.mxu0 %vm3498_vm0, %v3499_v1 }
  0xd0   : > { %3118 = vmatmul.mubr.msk.f32.gmra.mrb[6].mxu1 %vm634_vm2, %v582_v32 }
  0xd1   : > { %3120 = vmatprep.mubr.msk.f32.mxu1 %vm3498_vm0, %v3499_v1  ;;  %3137 = vmatmul.mubr.msk.f32.gmra.mrb[8].mxu0 %vm634_vm2, %v582_v32 }
  0xd2   : > { %3139 = vmatprep.mubr.msk.f32.mxu0 %vm3498_vm0, %v3499_v1 }
  0xd4   : > { %3121 = vmatmul.mubr.msk.f32.gmra.mrb[8].mxu1 %vm634_vm2, %v599_v35 }
  0xd5   : > { %3123 = vmatprep.mubr.msk.f32.mxu1 %vm3498_vm0, %v3499_v1  ;;  %3140 = vmatmul.mubr.msk.f32.gmra.mrb[10].mxu0 %vm634_vm2, %v599_v35 }
  0xd6   : > { %3142 = vmatprep.mubr.msk.f32.mxu0 %vm3498_vm0, %v3499_v1 }
  0xd8   : > { %3124 = vmatmul.mubr.msk.f32.gmra.mrb[10].mxu1 %vm634_vm2, %v616_v29 }
  0xd9   : > { %3126 = vmatprep.mubr.msk.f32.mxu1 %vm3498_vm0, %v3499_v1  ;;  %3143 = vmatmul.mubr.msk.f32.gmra.mrb[12].mxu0 %vm634_vm2, %v616_v29 }
  0xda   : > { %3145 = vmatprep.mubr.msk.f32.mxu0 %vm3498_vm0, %v3499_v1 }
  0xdc   : > { %3127 = vmatmul.mubr.msk.f32.gmra.mrb[12].mxu1 %vm634_vm2, %v633_v34 }
  0xdd   : > { %3146 = vmatmul.mubr.msk.f32.gmra.mrb[14].mxu0 %vm634_vm2, %v633_v34  ;;  %2853 = vmatprep.mubr.f32.mxu1 %v3499_v1 }
 0x192   : > { %v711_v36 = vpop.f32.mrb[0].mxu0 }
 0x193   : > { %v740_v37 = vcombine.high %v711_v36, %v711_v36  ;;  %v3097_v38 = vpop.f32.mrb[1].mxu0  ;;  %v3942_v39 = vrot.slane %v711_v36, %v3863_v19 }
 0x195   : > { %v3945_v40 = vrot.slane %v740_v37, %v3863_v19  ;;  %v3949_v43 = vcombine.high %v3942_v39, %v3942_v39  ;;  %v3015_v7 = vrot.slane %v3942_v39, 9 }
 0x197   : > { %v726_v1 = vpop.f32.mrb[0].mxu1  ;;  %v1040_v44 = vrot.slane %v3945_v40, 7  ;;  %v3954_v48 = vcombine.high %v3945_v40, %v3945_v40  ;;  %v1037_v54 = vrot.slane %v3949_v43, 7 }
 0x198   : > { %v791_v45 = vcombine.high %v726_v1, %v726_v1  ;;  %v3106_v46 = vpop.f32.mrb[1].mxu1  ;;  %v716_v47 = vpop.f32.mrb[2].mxu0  ;;  %v3957_v50 = vrot.slane %v726_v1, %v3863_v19 }
 0x199   : > { %v757_v51 = vcombine.high %v716_v47, %v716_v47  ;;  %v3960_v52 = vrot.slane %v716_v47, %v3863_v19  ;;  %v3100_v53 = vpop.f32.mrb[3].mxu0  ;;  %v1042_v59 = vrot.slane %v1040_v44, 2  ;;  %v1043_v63 = vrot.slane %v3954_v48, 7 }
 0x19a   : > { %v3964_v55 = vrot.slane %v791_v45, %v3863_v19  ;;  %v3987_v3 = vcombine.high %v3957_v50, %v3957_v50  ;;  %v1039_v8 = vrot.slane %v1037_v54, 2  ;;  %v4008_v16 = vsel %vm3981_vm9, %v3015_v7, %v1037_v54 }
 0x19b   : > { %v3967_v56 = vrot.slane %v757_v51, %v3863_v19  ;;  %v3971_v57 = vcombine.high %v3960_v52, %v3960_v52  ;;  %v731_v58 = vpop.f32.mrb[2].mxu1  ;;  %v5237_v17 = vrot.slane %v3957_v50, 7  ;;  %v4011_v20 = vrot.slane %v1043_v63, 2 }
 0x19c   : > { %v3975_v60 = vcombine.high %v3964_v55, %v3964_v55  ;;  %v3109_v61 = vpop.f32.mrb[3].mxu1  ;;  %v721_v62 = vpop.f32.mrb[4].mxu0  ;;  %v808_v10 = vcombine.high %v731_v58, %v731_v58  ;;  %v4001_v12 = vrot.slane %v731_v58, %v3863_v19  ;;  %v4017_v23 = vsel %vm3981_vm9, %v1042_v59, %v1043_v63 }
 0x19d   : > { %v3991_v4 = vcombine.high %v3967_v56, %v3967_v56  ;;  %v3103_v18 = vpop.f32.mrb[5].mxu0  ;;  %v774_v13 = vcombine.high %v721_v62, %v721_v62  ;;  %v4004_v14 = vrot.slane %v721_v62, %v3863_v19  ;;  %v5241_v24 = vrot.slane %v3987_v3, 7 }
 0x19e   : > { %v3018_v9 = vrot.slane %v3975_v60, 9  ;;  %v5240_v25 = vrot.slane %v3967_v56, 7  ;;  %v1076_v26 = vrot.slane %v4001_v12, 7  ;;  %v4028_v30 = vrot.slane %v808_v10, %v3863_v19 }
 0x19f   : > { %v5238_v11 = vrot.slane %v3991_v4, 7  ;;  %v1424_v15 = vpop.f32.mrb[4].mxu1  ;;  %v4023_v27 = vrot.slane %v774_v13, %v3863_v19  ;;  %v4032_v31 = vcombine.high %v4004_v14, %v4004_v14  ;;  %v899_v32 = vcombine.low %v3954_v48, %v4004_v14 }
 0x1a0   : > { %v3116_v21 = vpop.f32.mrb[5].mxu1  ;;  %v4013_v22 = vpop.f32.mrb[6].mxu0  ;;  %v4039_v34 = vcombine.high %v4001_v12, %v4001_v12  ;;  %v4043_v35 = vsel %vm3981_vm9, %v3018_v9, %v1076_v26  ;;  %v4047_v37 = vsel %vm3981_vm9, %v1039_v8, %v1040_v44  ;;  %v4051_v38 = vrot.slane %v5237_v17, 2 }
 0x1a1   : > { %v3135_v28 = vpop.f32.mrb[7].mxu0  ;;  %v1055_v29 = vrot.slane %v5238_v11, 2  ;;  %5309 = vst [vmem:[#allocation22_spill] sm:$0xff] %v4047_v37  ;;  %v1056_v1 = vrot.slane %v4004_v14, 7  ;;  %v4061_v47 = vrot.slane %v5241_v24, 2  ;;  %v4066_v48 = vrot.slane %v5240_v25, 2 }
 0x1a2   : > { %5308 = vst [vmem:[#allocation21_spill] sm:$0xff] %v4039_v34  ;;  %v1453_v49 = vcombine.high %v1424_v15, %v1424_v15  ;;  %v4070_v53 = vcombine.high %v4028_v30, %v4028_v30  ;;  %v5242_v54 = vrot.slane %v4028_v30, 7  ;;  %v4079_v61 = vrot.slane %v1076_v26, 2 }
 0x1a3   : > { %v1429_v36 = vpop.f32.mrb[6].mxu1  ;;  %v4075_v58 = vsel %vm3981_vm9, %v1055_v29, %v1056_v1  ;;  %v5239_v62 = vrot.slane %v4039_v34, 7  ;;  %v4083_v63 = vrot.slane %v1424_v15, %v3863_v19  ;;  %v881_v18 = vcombine.low %v3945_v40, %v3991_v4 }
 0x1a4   : > { %v3119_v45 = vpop.f32.mrb[7].mxu1  ;;  %v4057_v46 = vpop.f32.mrb[8].mxu0  ;;  %5310 = vst [vmem:[#allocation23_spill] sm:$0xff] %v4079_v61  ;;  %v4089_v8 = vcombine.high %v4023_v27, %v4023_v27  ;;  %v890_v9 = vcombine.low %v3957_v50, %v4039_v34  ;;  %v4094_v10 = vrot.slane %v899_v32, %v3979_v0  ;;  %v908_v13 = vcombine.low %v3987_v3, %v4028_v30 }
 0x1a5   : > { %v3138_v51 = vpop.f32.mrb[9].mxu0  ;;  %5311 = vst [vmem:[#allocation24_spill] sm:$0xff] %v4083_v63  ;;  %v4101_v21 = vrot.slane %v1453_v49, %v3863_v19  ;;  %v888_v40 = vrot.slane %v881_v18, %v3979_v0  ;;  %v1470_v26 = vcombine.high %v1429_v36, %v1429_v36  ;;  %v4105_v28 = vrot.slane %v1429_v36, %v3863_v19 }
 0x1a6   : > { %v4109_v32 = vrot.slane %v5242_v54, 2  ;;  %v897_v51 = vrot.slane %v890_v9, %v3979_v0  ;;  %v4116_v49 = vrot.slane %v5239_v62, 2  ;;  %v4120_v18 = vcombine.high %v4083_v63, %v4083_v63 }
 0x1a7   : > { %v1434_v7 = vpop.f32.mrb[8].mxu1  ;;  %v4123_v36 = vrot.slane %v1470_v26, %v3863_v19  ;;  %v4144_v41 = vcombine.high %v4101_v21, %v4101_v21 }
 0x1a8   : > { %v3122_v14 = vpop.f32.mrb[9].mxu1  ;;  %v4098_v15 = vpop.f32.mrb[10].mxu0  ;;  %5312 = vst [vmem:[#allocation25_spill] sm:$0xff] %v4120_v18  ;;  %v3013_v11 = vcombine.high %v888_v40, %v897_v51  ;;  %v1487_v33 = vcombine.high %v1434_v7, %v1434_v7  ;;  %v4151_v6 = vrot.slane %v1434_v7, %v3863_v19  ;;  %v969_v42 = vcombine.low %v888_v40, %v897_v51 }
 0x1a9   : > { %v3141_v29 = vpop.f32.mrb[11].mxu0  ;;  %v915_v14 = vrot.slane %v908_v13, %v3979_v0  ;;  %v4136_v24 = vcombine.high %v4123_v36, %v4123_v36  ;;  %5313 = vst [vmem:[#allocation26_spill] sm:$0xff] %v4144_v41  ;;  %v4156_v13 = vrot.slane %v1056_v1, 2  ;;  %v3033_v51 = vrot.slane %v4083_v63, 9 }
 0x1aa   : > { %v4127_v29 = vcombine.high %v4105_v28, %v4105_v28  ;;  %v4147_v9 = vrot.slane %v3013_v11, %v3863_v19  ;;  %v1765_v26 = vrot.slane %v4151_v6, 7  ;;  %v4179_v34 = vrot.slane %v1487_v33, %v3863_v19 }
 0x1ab   : > { %v1439_v17 = vpop.f32.mrb[10].mxu1  ;;  %v3014_v62 = vcombine.high %v4094_v10, %v915_v14  ;;  %v5246_v54 = vrot.slane %v4136_v24, 7  ;;  %v993_v7 = vcombine.low %v4094_v10, %v915_v14  ;;  %v5317_v63 = vrot.slane %v4101_v21, 7 }
 0x1ac   : > { %v3125_v44 = vpop.f32.mrb[11].mxu1  ;;  %v4132_v25 = vpop.f32.mrb[12].mxu0  ;;  %988 = vrot.lane.b32.xlu0 %v4147_v9, %s3502_s18  ;;  %v4196_v33 = vrot.slane %v1439_v17, %v3863_v19 }
 0x1ad   : > { %v3144_v45 = vpop.f32.mrb[13].mxu0  ;;  %v1013_v44 = vrot.slane %v3014_v62, %v3863_v19  ;;  %v4167_v62 = vcombine.high %v4151_v6, %v4151_v6  ;;  %v1764_v59 = vrot.slane %v5246_v54, 2 }
 0x1ae   : > { %v5314_v45 = vrot.slane %v4089_v8, 7 }
 0x1af   : > { %v1444_v5 = vpop.f32.mrb[12].mxu1  ;;  %1318 = vrot.lane.b32.xlu1 %v1013_v44, %s3502_s18  ;;  %5315 = vst [vmem:[#allocation27_spill] sm:$0xff] %v4167_v62  ;;  %v4193_v54 = vsel %vm3981_vm9, %v1764_v59, %v1765_v26  ;;  %v5323_v59 = vcombine.low %v4023_v27, %v3975_v60 }
 0x1b0   : > { %v4160_v11 = vrot.slane %v5314_v45, 2  ;;  %v3128_v40 = vpop.f32.mrb[13].mxu1  ;;  %v4171_v1 = vpop.f32.mrb[14].mxu0  ;;  %v1746_v45 = vrot.slane %v4120_v18, 7  ;;  %v4189_v18 = vrot.slane %v5317_v63, 2  ;;  %5319 = vst [vmem:[#allocation30_spill] sm:$0xff] %v4193_v54  ;;  %v5321_v63 = vcombine.low %v3942_v39, %v3971_v57 }
 0x1b1   : > { %v3147_v61 = vpop.f32.mrb[15].mxu0  ;;  %v4184_v40 = vrot.slane %v969_v42, %v3863_v19  ;;  %v4201_v42 = vrot.slane %v993_v7, %v3863_v19  ;;  %v4213_v14 = vrot.slane %v5323_v59, %v3979_v0  ;;  %v4221_v54 = vrot.slane %v1444_v5, %v3863_v19 }
 0x1b2   : > { %5318 = vst [vmem:[#allocation29_spill] sm:$0xff] %v4189_v18  ;;  %v1504_v61 = vcombine.high %v1439_v17, %v1439_v17  ;;  %v4207_v10 = vrot.slane %v5321_v63, %v3979_v0  ;;  %v1521_v17 = vcombine.high %v1444_v5, %v1444_v5  ;;  %v4225_v39 = vsel %vm3981_vm9, %v3033_v51, %v1746_v45 }
 0x1b3   : > { %5316 = vst [vmem:[#allocation28_spill] sm:$0xff] %v4184_v40  ;;  %1311 = vrot.lane.b32.xlu0 %v4184_v40, %s3503_s6  ;;  %5320 = vst [vmem:[#allocation31_spill] sm:$0xff] %v4201_v42  ;;  %v4227_v63 = vrot.slane %v1746_v45, 2  ;;  %1001 = vrot.lane.b32.xlu1 %v4201_v42, %s3503_s6  ;;  %v4235_v59 = vcombine.high %v4179_v34, %v4179_v34  ;;  %v4240_v5 = vcombine.high %v4196_v33, %v4196_v33 }
 0x1b4   : > { %5322 = vst [vmem:[#allocation32_spill] sm:$0xff] %v4207_v10  ;;  %5324 = vst [vmem:[#allocation33_spill] sm:$0xff] %v4213_v14  ;;  %v4218_v7 = vrot.slane %v1504_v61, %v3863_v19  ;;  %v3011_v60 = vcombine.high %v4207_v10, %v4213_v14  ;;  %v4247_v45 = vrot.slane %v1521_v17, %v3863_v19  ;;  %v5329_v14 = vrot.slane %v4123_v36, 7 }
 0x1b5   : > { %5325 = vst [vmem:[#allocation34_spill] sm:$0xff] %v4225_v39  ;;  %5326 = vst [vmem:[#allocation35_spill] sm:$0xff] %v4227_v63  ;;  %v4253_v10 = vcombine.high %v4221_v54, %v4221_v54  ;;  %v5331_v18 = vrot.slane %v4144_v41, 7  ;;  %v4268_v40 = vrot.slane %v1765_v26, 2  ;;  %v1298_v39 = vcombine.low %v3964_v55, %v4070_v53 }
 0x1b6   : > { %5327 = vst [vmem:[#allocation36_spill] sm:$0xff] %v4240_v5  ;;  %v4244_v51 = vcombine.high %v4218_v7, %v4218_v7  ;;  %5328 = vst [vmem:[#allocation37_spill] sm:$0xff] %v4247_v45  ;;  %v937_v37 = vrot.slane %v3011_v60, %v3863_v19  ;;  %v4259_v42 = vrot.slane %v5329_v14, 2  ;;  %v5334_v60 = vcombine.low %v3960_v52, %v4032_v31 }
 0x1b7   : > { %v4263_v63 = vrot.slane %v5331_v18, 2  ;;  %5333 = vst [vmem:[#allocation40_spill] sm:$0xff] %v4268_v40  ;;  %1014 = vrot.lane.b32.xlu1 %v1013_v44, %s3504_s28  ;;  %v5251_v18 = vrot.slane %v4221_v54, 7  ;;  %v872_v44 = vcombine.low %v4089_v8, %v4001_v12  ;;  %v4306_v14 = vrot.slane %v4013_v22, %v3863_v19 }
 0x1b8   : > { %5330 = vst [vmem:[#allocation38_spill] sm:$0xff] %v4259_v42  ;;  %v3036_v17 = vrot.slane %v4244_v51, 9  ;;  %938 = vrot.lane.b32.xlu0 %v937_v37, %s3502_s18  ;;  %v1296_v26 = vrot.slane %v5334_v60, %v3979_v0  ;;  %v1305_v60 = vrot.slane %v1298_v39, %v3979_v0  ;;  %v2162_v37 = vcombine.high %v4013_v22, %v4013_v22 }
 0x1b9   : > { %5332 = vst [vmem:[#allocation39_spill] sm:$0xff] %v4263_v63  ;;  %v5336_v63 = vcombine.low %v3949_v43, %v3967_v56  ;;  %v879_v12 = vrot.slane %v872_v44, %v3979_v0  ;;  %v5338_v43 = vrot.slane %v4032_v31, 7  ;;  %v5339_v44 = vrot.slane %v4070_v53, 7 }
 0x1ba   : > { %v4292_v61 = vsel %vm3981_vm9, %v3036_v17, %v5251_v18  ;;  %v5337_v17 = vrot.slane %v3960_v52, 7  ;;  %v1323_v22 = vcombine.low %v1296_v26, %v1305_v60  ;;  %v3023_v18 = vcombine.high %v1296_v26, %v1305_v60 }
 0x1bb   : > { %5335 = vst [vmem:[#allocation41_spill] sm:$0xff] %v4292_v61  ;;  %v870_v42 = vrot.slane %v5336_v63, %v3979_v0  ;;  %1314 = vrot.lane.b32.xlu1 %v4147_v9, %s3504_s28  ;;  %v1060_v63 = vsel %vm3981_vm9, %v4156_v13, %v5338_v43  ;;  %v1086_v9 = vsel %vm3981_vm9, %v4109_v32, %v5339_v44  ;;  %v5340_v61 = vrot.slane %v4240_v5, 7 }
 0x1bc   : > { %v1047_v39 = vsel %vm3981_vm9, %v4011_v20, %v5337_v17  ;;  %v4330_v31 = vcombine.high %v4247_v45, %v4247_v45  ;;  %v5341_v53 = vrot.slane %v4235_v59, 7  ;;  %v1330_v32 = vrot.slane %v1323_v22, %v3863_v19 }
 0x1bd   : > { %v943_v40 = vcombine.low %v870_v42, %v879_v12  ;;  %v3012_v52 = vcombine.high %v870_v42, %v879_v12  ;;  %v4325_v62 = vrot.slane %v5340_v61, 2  ;;  %v1157_v13 = vcombine.low %v1047_v39, %v1060_v63 }
 0x1be   : > { %v4334_v17 = vrot.slane %v5341_v53, 2  ;;  %v1343_v26 = vrot.slane %v3023_v18, %v3863_v19  ;;  %v5342_v42 = vrot.slane %v3964_v55, 7  ;;  %v4344_v60 = vrot.slane %v2162_v37, %v3863_v19  ;;  %1331 = vrot.lane.b32.xlu0 %v1330_v32, %s3503_s6 }
 0x1bf   : > { %v4348_v12 = vcombine.high %v4306_v14, %v4306_v14  ;;  %v4351_v39 = vrot.slane %v1157_v13, %v3979_v0  ;;  %v5254_v63 = vrot.slane %v4247_v45, 7  ;;  %v3051_v55 = vrot.slane %v4306_v14, 9 }
 0x1c0   : > { %v1073_v61 = vsel %vm3981_vm9, %v4061_v47, %v5342_v42  ;;  %1344 = vrot.lane.b32.xlu1 %v1343_v26, %s3504_s28  ;;  %v5343_v47 = vrot.slane %v4028_v30, 7  ;;  %v1139_v37 = vcombine.low %v4017_v23, %v4075_v58  ;;  %v4365_v44 = vrot.slane %v943_v40, %v3863_v19 }
 0x1c1   : > { %v1166_v43 = vcombine.low %v1073_v61, %v1086_v9  ;;  %v963_v9 = vrot.slane %v3012_v52, %v3863_v19  ;;  %v5345_v13 = vrot.slane %v3987_v3, 7  ;;  %v2179_v23 = vcombine.high %v4057_v46, %v4057_v46 }
 0x1c2   : > { %v1083_v18 = vsel %vm3981_vm9, %v4116_v49, %v5343_v47  ;;  %5344 = vst [vmem:[#allocation42_spill] sm:$0xff] %v4365_v44  ;;  %v4375_v53 = vrot.slane %v1139_v37, %v3979_v0  ;;  %v4381_v58 = vrot.slane %v4057_v46, %v3863_v19  ;;  %v2449_v40 = vrot.slane %v4348_v12, 7  ;;  %951 = vrot.lane.b32.xlu0 %v4365_v44, %s3503_s6 }
 0x1c3   : > { %v1173_v22 = vrot.slane %v1166_v43, %v3979_v0  ;;  %v1070_v30 = vsel %vm3981_vm9, %v4051_v38, %v5345_v13  ;;  %v4387_v3 = vcombine.high %v4344_v60, %v4344_v60  ;;  %v4391_v38 = vrot.slane %v4098_v15, %v3863_v19 }
 0x1c4   : > { %5346 = vst [vmem:[#allocation43_spill] sm:$0xff] %v4375_v53  ;;  %v1148_v49 = vcombine.low %v1070_v30, %v1083_v18  ;;  %5347 = vst [vmem:[#allocation44_spill] sm:$0xff] %v4381_v58  ;;  %1308 = vrot.lane.b32.xlu1 %v963_v9, %s3502_s18  ;;  %v5256_v46 = vrot.slane %v4344_v60, 7  ;;  %v4401_v26 = vrot.slane %v2179_v23, %v3863_v19  ;;  %v5350_v23 = vrot.slane %v4221_v54, 7 }
 0x1c5   : > { %v1251_v52 = vcombine.low %v4351_v39, %v1173_v22  ;;  %v4405_v42 = vcombine.high %v4381_v58, %v4381_v58  ;;  %v4411_v47 = vcombine.high %v4391_v38, %v4391_v38  ;;  %v4431_v20 = vrot.slane %v5254_v63, 2 }
 0x1c6   : > { %v4398_v32 = vrot.slane %v1148_v49, %v3979_v0  ;;  %v4419_v13 = vcombine.high %v4401_v26, %v4401_v26  ;;  %v2196_v18 = vcombine.high %v4098_v15, %v4098_v15  ;;  %964 = vrot.lane.b32.xlu0 %v963_v9, %s3504_s28  ;;  %v4439_v30 = vsel %vm3981_vm9, %v3051_v55, %v2449_v40 }
 0x1c7   : > { %v1258_v43 = vrot.slane %v1251_v52, %v3863_v19  ;;  %5349 = vst [vmem:[#allocation46_spill] sm:$0xff] %v4411_v47  ;;  %v4427_v52 = vrot.slane %v5350_v23, 2  ;;  %v4441_v49 = vrot.slane %v2449_v40, 2  ;;  %v4445_v23 = vrot.slane %v5256_v46, 2  ;;  %v5371_v47 = vld [vmem:[#allocation24_spill] sm:$0xff] }
 0x1c8   : > { %5348 = vst [vmem:[#allocation45_spill] sm:$0xff] %v4398_v32  ;;  %v3021_v37 = vcombine.high %v4375_v53, %v4398_v32  ;;  %v5261_v63 = vrot.slane %v4419_v13, 7  ;;  %v2468_v9 = vrot.slane %v4391_v38, 7  ;;  %v5351_v44 = vrot.slane %v3967_v56, 7 }
 0x1c9   : > { %1259 = vrot.lane.b32.xlu1 %v1258_v43, %s3503_s6  ;;  %v5352_v46 = vrot.slane %v3971_v57, 9  ;;  %v5353_v53 = vrot.slane %v4089_v8, 7  ;;  %v3022_v32 = vcombine.high %v4351_v39, %v1173_v22  ;;  %v4470_v55 = vrot.slane %v2196_v18, %v3863_v19 }
 0x1ca   : > { %v1245_v61 = vrot.slane %v3021_v37, %v3863_v19  ;;  %v2467_v40 = vrot.slane %v5261_v63, 2  ;;  %v5354_v37 = vrot.slane %v4023_v27, 9  ;;  %v2213_v57 = vcombine.high %v4132_v25, %v4132_v25 }
 0x1cb   : > { %v1051_v43 = vsel %vm3981_vm9, %v5352_v46, %v5351_v44  ;;  %v4483_v8 = vrot.slane %v4132_v25, %v3863_v19  ;;  %v5355_v39 = vrot.slane %v3991_v4, 7  ;;  %v5266_v46 = vrot.slane %v4401_v26, 7 }
 0x1cc   : > { %v1064_v15 = vsel %vm3981_vm9, %v5354_v37, %v5353_v53  ;;  %v1103_v63 = vcombine.low %v4008_v16, %v1051_v43  ;;  %1246 = vrot.lane.b32.xlu0 %v1245_v61, %s3502_s18  ;;  %v4479_v27 = vsel %vm3981_vm9, %v2467_v40, %v2468_v9  ;;  %v4503_v4 = vrot.slane %v2213_v57, %v3863_v19  ;;  %v5360_v61 = vld [vmem:[#allocation22_spill] sm:$0xff]  ;;  %v5361_v40 = vld [vmem:[#allocation21_spill] sm:$0xff]  ;;  %v5363_v37 = vld [vmem:[#allocation23_spill] sm:$0xff] }
 0x1cd   : > { %v1112_v56 = vcombine.low %v1064_v15, %v4043_v35  ;;  %v1054_v16 = vsel %vm3981_vm9, %v4066_v48, %v5355_v39  ;;  %v5356_v35 = vrot.slane %v3957_v50, 7  ;;  %v1271_v50 = vrot.slane %v3022_v32, %v3863_v19 }
 0x1ce   : > { %v4497_v53 = vrot.slane %v1103_v63, %v3979_v0  ;;  %5359 = vst [vmem:[#allocation49_spill] sm:$0xff] %v4503_v4  ;;  %v1121_v18 = vcombine.low %v5360_v61, %v1054_v16  ;;  %v4514_v15 = vcombine.high %v4503_v4, %v4503_v4  ;;  %v5362_v43 = vrot.slane %v5361_v40, 7 }
 0x1cf   : > { %v1067_v44 = vsel %vm3981_vm9, %v4160_v11, %v5356_v35  ;;  %v4500_v25 = vrot.slane %v1112_v56, %v3979_v0  ;;  %v4524_v32 = vcombine.high %v4483_v8, %v4483_v8  ;;  %v2230_v16 = vcombine.high %v4171_v1, %v4171_v1 }
 0x1d0   : > { %5357 = vst [vmem:[#allocation47_spill] sm:$0xff] %v4497_v53  ;;  %v1080_v56 = vsel %vm3981_vm9, %v5363_v37, %v5362_v43  ;;  %1272 = vrot.lane.b32.xlu0 %v1271_v50, %s3504_s28  ;;  %v3054_v61 = vrot.slane %v4514_v15, 9  ;;  %v4533_v40 = vcombine.high %v4470_v55, %v4470_v55  ;;  %v4537_v50 = vrot.slane %v4171_v1, %v3863_v19 }
 0x1d1   : > { %5358 = vst [vmem:[#allocation48_spill] sm:$0xff] %v4500_v25  ;;  %v3019_v63 = vcombine.high %v4497_v53, %v4500_v25  ;;  %v1130_v39 = vcombine.low %v1067_v44, %v1080_v56  ;;  %v1128_v43 = vrot.slane %v1121_v18, %v3979_v0  ;;  %v4542_v44 = vrot.slane %v2230_v16, %v3863_v19  ;;  %v5364_v56 = vld [vmem:[#allocation25_spill] sm:$0xff] }
 0x1d2   : > { %v4553_v22 = vcombine.high %v4537_v50, %v4537_v50  ;;  %v2294_v1 = vcombine.low %v4533_v40, %v4537_v50  ;;  %v4567_v48 = vrot.slane %v5266_v46, 2  ;;  %v5367_v25 = vrot.slane %v4537_v50, 7 }
 0x1d3   : > { %v1195_v35 = vrot.slane %v3019_v63, %v3863_v19  ;;  %v1137_v37 = vrot.slane %v1130_v39, %v3979_v0  ;;  %v5365_v63 = vcombine.low %v5364_v56, %v4123_v36  ;;  %v5366_v39 = vcombine.low %v4235_v59, %v4221_v54 }
 0x1d4   : > { %v2312_v18 = vcombine.low %v4483_v8, %v4553_v22  ;;  %v4576_v54 = vsel %vm3981_vm9, %v3054_v61, %v5367_v25  ;;  %v5372_v58 = vcombine.low %v5371_v47, %v4127_v29  ;;  %v1567_v61 = vcombine.low %v4179_v34, %v4244_v51 }
 0x1d5   : > { %v4548_v11 = vrot.slane %v5365_v63, %v3979_v0  ;;  %1196 = vrot.lane.b32.xlu1 %v1195_v35, %s3502_s18  ;;  %v1592_v16 = vrot.slane %v5366_v39, %v3979_v0  ;;  %v1201_v63 = vcombine.low %v1128_v43, %v1137_v37  ;;  %v3020_v57 = vcombine.high %v1128_v43, %v1137_v37 }
 0x1d6   : > { %v5368_v43 = vrot.slane %v4387_v3, 7  ;;  %v4582_v39 = vrot.slane %v2468_v9, 2  ;;  %v4592_v25 = vrot.slane %v5372_v58, %v3979_v0  ;;  %v5374_v9 = vrot.slane %v4483_v8, 7 }
 0x1d7   : > { %v1208_v46 = vrot.slane %v1201_v63, %v3863_v19  ;;  %v1221_v35 = vrot.slane %v3020_v57, %v3863_v19  ;;  %v3030_v56 = vcombine.high %v4548_v11, %v1592_v16  ;;  %v5375_v63 = vrot.slane %v4524_v32, 7 }
 0x1d8   : > { %v4580_v37 = vrot.slane %v5368_v43, 2  ;;  %5370 = vst [vmem:[#allocation21_spill] sm:$0xff] %v4582_v39  ;;  %5373 = vst [vmem:[#allocation23_spill] sm:$0xff] %v4592_v25  ;;  %v4598_v43 = vrot.slane %v5374_v9, 2  ;;  %v5377_v58 = vcombine.low %v4144_v41, %v4151_v6  ;;  %v5378_v51 = vcombine.low %v4240_v5, %v4247_v45 }
 0x1d9   : > { %v4602_v57 = vrot.slane %v5375_v63, 2  ;;  %1209 = vrot.lane.b32.xlu1 %v1208_v46, %s3503_s6  ;;  %1222 = vrot.lane.b32.xlu0 %v1221_v35, %s3504_s28  ;;  %v4616_v4 = vrot.slane %v1567_v61, %v3979_v0  ;;  %v1656_v63 = vcombine.low %v4548_v11, %v1592_v16  ;;  %v1594_v46 = vcombine.low %v4101_v21, %v4136_v24  ;;  %v5381_v11 = vld [vmem:[#allocation27_spill] sm:$0xff] }
 0x1da   : > { %5369 = vst [vmem:[#allocation22_spill] sm:$0xff] %v4580_v37  ;;  %v1619_v47 = vrot.slane %v5377_v58, %v3979_v0  ;;  %v1628_v53 = vrot.slane %v5378_v51, %v3979_v0  ;;  %v1676_v35 = vrot.slane %v3030_v56, %v3863_v19  ;;  %v5380_v58 = vcombine.low %v4196_v33, %v4253_v10 }
 0x1db   : > { %5376 = vst [vmem:[#allocation25_spill] sm:$0xff] %v4602_v57  ;;  %5379 = vst [vmem:[#allocation24_spill] sm:$0xff] %v4616_v4  ;;  %v3029_v51 = vcombine.high %v4592_v25, %v4616_v4  ;;  %v1601_v61 = vrot.slane %v1594_v46, %v3979_v0  ;;  %v5382_v16 = vcombine.low %v4105_v28, %v5381_v11  ;;  %v5388_v37 = vrot.slane %v4127_v29, 9 }
 0x1dc   : > { %v1706_v57 = vcombine.low %v1619_v47, %v1628_v53  ;;  %v3032_v6 = vcombine.high %v1619_v47, %v1628_v53  ;;  %v1610_v45 = vrot.slane %v5380_v58, %v3979_v0  ;;  %v2001_v56 = vcombine.low %v4218_v7, %v4330_v31 }
 0x1dd   : > { %v4633_v9 = vrot.slane %v5382_v16, %v3979_v0  ;;  %v4639_v53 = vcombine.high %v4542_v44, %v4542_v44  ;;  %1677 = vrot.lane.b32.xlu1 %v1676_v35, %s3504_s28  ;;  %v5384_v46 = vcombine.low %v4306_v14, %v4405_v42  ;;  %v2276_v16 = vcombine.low %v4470_v55, %v4514_v15 }
 0x1de   : > { %v4643_v47 = vrot.slane %v1706_v57, %v3863_v19  ;;  %v1650_v25 = vrot.slane %v3029_v51, %v3863_v19  ;;  %v1682_v4 = vcombine.low %v1601_v61, %v1610_v45  ;;  %v3031_v5 = vcombine.high %v1601_v61, %v1610_v45 }
 0x1df   : > { %v4649_v58 = vrot.slane %v5384_v46, %v3979_v0  ;;  %v4655_v41 = vrot.slane %v2001_v56, %v3979_v0  ;;  %v4658_v39 = vrot.slane %v2276_v16, %v3979_v0  ;;  %v5387_v57 = vrot.slane %v4123_v36, 7  ;;  %v5394_v16 = vld [vmem:[#allocation41_spill] sm:$0xff] }
 0x1e0   : > { %5383 = vst [vmem:[#allocation27_spill] sm:$0xff] %v4643_v47  ;;  %v5389_v46 = vrot.slane %v4235_v59, 7  ;;  %v5390_v15 = vrot.slane %v4179_v34, 9  ;;  %v5391_v51 = vcombine.low %v4348_v12, %v4401_v26  ;;  %v5392_v36 = vrot.slane %v4533_v40, 7  ;;  %1651 = vrot.lane.b32.xlu0 %v1650_v25, %s3502_s18  ;;  %v5393_v34 = vld [vmem:[#allocation34_spill] sm:$0xff] }
 0x1e1   : > { %5385 = vst [vmem:[#allocation50_spill] sm:$0xff] %v4649_v58  ;;  %5386 = vst [vmem:[#allocation51_spill] sm:$0xff] %v4658_v39  ;;  %v1760_v14 = vsel %vm3981_vm9, %v5388_v37, %v5387_v57  ;;  %v2491_v29 = vrot.slane %v4553_v22, 7  ;;  %v2026_v59 = vcombine.low %v4633_v9, %v4655_v41  ;;  %1714 = vrot.lane.b32.xlu1 %v4643_v47, %s3503_s6  ;;  %v5400_v22 = vld [vmem:[#allocation35_spill] sm:$0xff] }
 0x1e2   : > { %v1773_v45 = vsel %vm3981_vm9, %v5390_v15, %v5389_v46  ;;  %v4676_v61 = vrot.slane %v5391_v51, %v3979_v0  ;;  %v2477_v56 = vrot.slane %v5392_v36, 2  ;;  %v1812_v37 = vcombine.low %v5393_v34, %v1760_v14 }
 0x1e3   : > { %v3047_v12 = vcombine.high %v4649_v58, %v4658_v39  ;;  %v1821_v57 = vcombine.low %v1773_v45, %v5394_v16  ;;  %v4691_v46 = vrot.slane %v2294_v1, %v3979_v0  ;;  %v4696_v25 = vrot.slane %v1656_v63, %v3863_v19  ;;  %v5402_v63 = vld [vmem:[#allocation38_spill] sm:$0xff]  ;;  %v5408_v39 = vld [vmem:[#allocation40_spill] sm:$0xff] }
 0x1e4   : > { %v4699_v15 = vrot.slane %v1812_v37, %v3979_v0  ;;  %v2303_v14 = vcombine.low %v4344_v60, %v4419_v13  ;;  %v4704_v51 = vrot.slane %v2312_v18, %v3979_v0  ;;  %v5396_v45 = vrot.slane %v4537_v50, 7 }
 0x1e5   : > { %5395 = vst [vmem:[#allocation34_spill] sm:$0xff] %v4696_v25  ;;  %v1726_v1 = vrot.slane %v3032_v6, %v3863_v19  ;;  %v4710_v34 = vrot.slane %v1821_v57, %v3979_v0  ;;  %1664 = vrot.lane.b32.xlu0 %v4696_v25, %s3503_s6  ;;  %v5397_v50 = vcombine.low %v4387_v3, %v4391_v38  ;;  %v5399_v18 = vrot.slane %v4101_v21, 7 }
 0x1e6   : > { %v2490_v36 = vrot.slane %v5396_v45, 2  ;;  %v4717_v37 = vrot.slane %v2303_v14, %v3979_v0  ;;  %v5398_v16 = vcombine.low %v4524_v32, %v4542_v44  ;;  %v2494_v45 = vrot.slane %v4542_v44, 7  ;;  %v5406_v44 = vld [vmem:[#allocation39_spill] sm:$0xff] }
 0x1e7   : > { %v4725_v6 = vrot.slane %v5397_v50, %v3979_v0  ;;  %1727 = vrot.lane.b32.xlu1 %v1726_v1, %s3504_s28  ;;  %v1750_v38 = vsel %vm3981_vm9, %v5400_v22, %v5399_v18  ;;  %v5401_v50 = vrot.slane %v4136_v24, 7  ;;  %v2493_v47 = vrot.slane %v2491_v29, 2 }
 0x1e8   : > { %v4731_v57 = vrot.slane %v5398_v16, %v3979_v0  ;;  %v5403_v14 = vrot.slane %v4196_v33, 7  ;;  %v4757_v22 = vrot.slane %v1682_v4, %v3863_v19  ;;  %v5404_v24 = vrot.slane %v4253_v10, 7 }
 0x1e9   : > { %v1763_v16 = vsel %vm3981_vm9, %v5402_v63, %v5401_v50  ;;  %v5405_v50 = vrot.slane %v4105_v28, 7  ;;  %2011 = vrot.lane.b32.xlu0 %v1676_v35, %s3502_s18  ;;  %v2033_v4 = vrot.slane %v2026_v59, %v3863_v19  ;;  %v5407_v58 = vrot.slane %v5381_v11, 7 }
 0x1ea   : > { %v1776_v21 = vsel %vm3981_vm9, %v4334_v17, %v5403_v14  ;;  %v1789_v63 = vsel %vm3981_vm9, %v4427_v52, %v5404_v24  ;;  %v1830_v18 = vcombine.low %v1750_v38, %v1763_v16  ;;  %v1700_v17 = vrot.slane %v3031_v5, %v3863_v19 }
 0x1eb   : > { %v1756_v25 = vsel %vm3981_vm9, %v5406_v44, %v5405_v50  ;;  %v1839_v14 = vcombine.low %v1776_v21, %v1789_v63  ;;  %v1769_v52 = vsel %vm3981_vm9, %v5408_v39, %v5407_v58  ;;  %2014 = vrot.lane.b32.xlu1 %v4757_v22, %s3503_s6  ;;  %v5409_v38 = vrot.slane %v4218_v7, 7 }
 0x1ec   : > { %v4780_v28 = vrot.slane %v1830_v18, %v3979_v0  ;;  %v5410_v35 = vrot.slane %v4330_v31, 7  ;;  %v1866_v59 = vcombine.low %v1756_v25, %v1769_v52  ;;  %v5411_v16 = vrot.slane %v4344_v60, 7 }
 0x1ed   : > { %v1782_v5 = vsel %vm3981_vm9, %v4325_v62, %v5409_v38  ;;  %v4793_v39 = vrot.slane %v1839_v14, %v3979_v0  ;;  %v5412_v44 = vrot.slane %v4419_v13, 7  ;;  %v2492_v60 = vsel %vm3981_vm9, %v2490_v36, %v2491_v29  ;;  %1701 = vrot.lane.b32.xlu0 %v1700_v17, %s3502_s18 }
 0x1ee   : > { %v1795_v11 = vsel %vm3981_vm9, %v4431_v20, %v5410_v35  ;;  %v2453_v7 = vsel %vm3981_vm9, %v4441_v49, %v5411_v16  ;;  %v4806_v31 = vrot.slane %v1866_v59, %v3979_v0  ;;  %v5413_v20 = vrot.slane %v4483_v8, 7 }
 0x1ef   : > { %v1875_v58 = vcombine.low %v1782_v5, %v1795_v11  ;;  %v2466_v62 = vsel %vm3981_vm9, %v4567_v48, %v5412_v44  ;;  %v1910_v13 = vcombine.low %v4780_v28, %v4793_v39  ;;  %v3038_v48 = vcombine.high %v4780_v28, %v4793_v39  ;;  %2034 = vrot.lane.b32.xlu1 %v2033_v4, %s3503_s6 }
 0x1f0   : > { %v2479_v25 = vsel %vm3981_vm9, %v2477_v56, %v5413_v20  ;;  %v2533_v21 = vcombine.low %v2453_v7, %v2466_v62  ;;  %v2415_v56 = vcombine.low %v4725_v6, %v4731_v57  ;;  %v5414_v29 = vrot.slane %v4387_v3, 7  ;;  %v5422_v7 = vld [vmem:[#allocation44_spill] sm:$0xff]  ;;  %v5424_v62 = vld [vmem:[#allocation22_spill] sm:$0xff] }
 0x1f1   : > { %v4818_v49 = vrot.slane %v1875_v58, %v3979_v0  ;;  %v2542_v24 = vcombine.low %v2479_v25, %v2492_v60  ;;  %v5415_v63 = vrot.slane %v4524_v32, 7  ;;  %v2496_v50 = vrot.slane %v2494_v45, 2  ;;  %2021 = vrot.lane.b32.xlu0 %v1726_v1, %s3502_s18  ;;  %v5425_v25 = vld [vmem:[#allocation46_spill] sm:$0xff]  ;;  %v5427_v60 = vld [vmem:[#allocation21_spill] sm:$0xff] }
 0x1f2   : > { %v4824_v8 = vrot.slane %v2533_v21, %v3979_v0  ;;  %v2456_v36 = vsel %vm3981_vm9, %v4445_v23, %v5414_v29  ;;  %v2497_v4 = vrot.slane %v4639_v53, 7  ;;  %v2359_v3 = vrot.slane %v3047_v12, %v3863_v19 }
 0x1f3   : > { %v2482_v18 = vsel %vm3981_vm9, %v4598_v43, %v5415_v63  ;;  %v1960_v14 = vcombine.low %v4806_v31, %v4818_v49  ;;  %v3040_v52 = vcombine.high %v4806_v31, %v4818_v49  ;;  %v4845_v38 = vrot.slane %v2542_v24, %v3979_v0  ;;  %v5429_v24 = vld [vmem:[#allocation49_spill] sm:$0xff] }
 0x1f4   : > { %v2495_v23 = vsel %vm3981_vm9, %v2493_v47, %v2494_v45  ;;  %v2551_v32 = vcombine.low %v2456_v36, %v4479_v27  ;;  %v5416_v43 = vrot.slane %v4196_v33, 7  ;;  %v5417_v35 = vrot.slane %v4253_v10, 7  ;;  %2360 = vrot.lane.b32.xlu1 %v2359_v3, %s3502_s18  ;;  %v5431_v36 = vld [vmem:[#allocation25_spill] sm:$0xff] }
 0x1f5   : > { %v2560_v59 = vcombine.low %v2482_v18, %v2495_v23  ;;  %v5418_v58 = vrot.slane %v4401_v26, 7  ;;  %v5419_v12 = vrot.slane %v4405_v42, 9  ;;  %v3056_v27 = vcombine.high %v4824_v8, %v4845_v38  ;;  %2017 = vrot.lane.b32.xlu0 %v1700_v17, %s3504_s28 }
 0x1f6   : > { %v1777_v5 = vrot.slane %v5416_v43, 2  ;;  %v1790_v11 = vrot.slane %v5417_v35, 2  ;;  %v4865_v33 = vrot.slane %v2551_v32, %v3979_v0  ;;  %v5420_v10 = vrot.slane %v4533_v40, 7  ;;  %v5432_v35 = vld [vmem:[#allocation26_spill] sm:$0xff] }
 0x1f7   : > { %v2463_v16 = vsel %vm3981_vm9, %v5419_v12, %v5418_v58  ;;  %v5421_v47 = vrot.slane %v4470_v55, 9  ;;  %v4875_v1 = vrot.slane %v2560_v59, %v3979_v0  ;;  %v5423_v44 = vrot.slane %v5422_v7, 7  ;;  %v5434_v58 = vld [vmem:[#allocation29_spill] sm:$0xff] }
 0x1f8   : > { %v2515_v42 = vcombine.low %v4439_v30, %v2463_v16  ;;  %v5426_v40 = vrot.slane %v5425_v25, 7  ;;  %v5428_v30 = vcombine.high %v4676_v61, %v4691_v46  ;;  %v5430_v29 = vrot.slane %v5429_v24, 7  ;;  %v5437_v16 = vld [vmem:[#allocation37_spill] sm:$0xff] }
 0x1f9   : > { %v2476_v26 = vsel %vm3981_vm9, %v5421_v47, %v5420_v10  ;;  %v2459_v20 = vsel %vm3981_vm9, %v5424_v62, %v5423_v44  ;;  %v2498_v18 = vsel %vm3981_vm9, %v2496_v50, %v2497_v4  ;;  %v3057_v3 = vcombine.high %v4865_v33, %v4875_v1  ;;  %v5435_v50 = vld [vmem:[#allocation36_spill] sm:$0xff] }
 0x1fa   : > { %v2524_v45 = vcombine.low %v2476_v26, %v4576_v54  ;;  %v2472_v55 = vsel %vm3981_vm9, %v5427_v60, %v5426_v40  ;;  %v4892_v21 = vrot.slane %v5428_v30, %v3863_v19  ;;  %v4895_v54 = vrot.slane %v2515_v42, %v3979_v0 }
 0x1fb   : > { %v2485_v63 = vsel %vm3981_vm9, %v5431_v36, %v5430_v29  ;;  %v2569_v32 = vcombine.low %v2459_v20, %v2472_v55  ;;  %v5433_v59 = vrot.slane %v5432_v35, 7  ;;  %v5436_v4 = vrot.slane %v5435_v50, 7  ;;  %v5441_v20 = vld [vmem:[#allocation30_spill] sm:$0xff] }
 0x1fc   : > { %v4908_v23 = vrot.slane %v2524_v45, %v3979_v0  ;;  %v2578_v43 = vcombine.low %v2485_v63, %v2498_v18  ;;  %2386 = vrot.lane.b32.xlu1 %v4892_v21, %s3504_s28  ;;  %v5438_v10 = vrot.slane %v5437_v16, 7  ;;  %v2613_v26 = vcombine.low %v4824_v8, %v4845_v38 }
 0x1fd   : > { %v1753_v12 = vsel %vm3981_vm9, %v5434_v58, %v5433_v59  ;;  %v1779_v17 = vsel %vm3981_vm9, %v1777_v5, %v5436_v4  ;;  %v5439_v42 = vcombine.high %v4699_v15, %v4710_v34  ;;  %v2576_v62 = vrot.slane %v2569_v32, %v3979_v0  ;;  %v5445_v58 = vld [vmem:[#allocation45_spill] sm:$0xff]  ;;  %v5447_v4 = vld [vmem:[#allocation48_spill] sm:$0xff] }
 0x1fe   : > { %v1792_v47 = vsel %vm3981_vm9, %v1790_v11, %v5438_v10  ;;  %v3055_v44 = vcombine.high %v4895_v54, %v4908_v23  ;;  %v2585_v5 = vrot.slane %v2578_v43, %v3979_v0  ;;  %v5440_v2 = vcombine.high %v4717_v37, %v4704_v51  ;;  %v5451_v10 = vld [vmem:[#allocation51_spill] sm:$0xff] }
 0x1ff   : > { %v1904_v45 = vrot.slane %v5439_v42, %v3863_v19  ;;  %v1848_v40 = vcombine.low %v1753_v12, %v5441_v20  ;;  %v1857_v60 = vcombine.low %v1779_v17, %v1792_v47  ;;  %v5442_v29 = vcombine.low %v5422_v7, %v5425_v25  ;;  %v5446_v12 = vld [vmem:[#allocation43_spill] sm:$0xff]  ;;  %v5449_v17 = vld [vmem:[#allocation24_spill] sm:$0xff]  ;;  %v5452_v47 = vld [vmem:[#allocation50_spill] sm:$0xff] }
 0x200   : > { %v2409_v11 = vrot.slane %v5440_v2, %v3863_v19  ;;  %v2663_v55 = vcombine.low %v2576_v62, %v2585_v5  ;;  %v3058_v30 = vcombine.high %v2576_v62, %v2585_v5  ;;  %v2710_v63 = vcombine.low %v5429_v24, %v4639_v53 }
 0x201   : > { %1905 = vrot.lane.b32.xlu0 %v1904_v45, %s3502_s18  ;;  %v2708_v36 = vrot.slane %v5442_v29, %v3979_v0  ;;  %v4949_v18 = vrot.slane %v1848_v40, %v3979_v0  ;;  %v4952_v32 = vrot.slane %v1857_v60, %v3979_v0  ;;  %v2391_v43 = vcombine.low %v4717_v37, %v4704_v51 }
 0x202   : > { %2410 = vrot.lane.b32.xlu1 %v2409_v11, %s3502_s18  ;;  %v5443_v35 = vcombine.high %v4633_v9, %v4655_v41  ;;  %v2717_v25 = vrot.slane %v2710_v63, %v3979_v0  ;;  %v5444_v53 = vcombine.high %v4725_v6, %v4731_v57  ;;  %v1227_v50 = vcombine.low %v5446_v12, %v5445_v58  ;;  %v5448_v41 = vld [vmem:[#allocation47_spill] sm:$0xff] }
 0x203   : > { %v3039_v59 = vcombine.high %v4949_v18, %v4952_v32  ;;  %v1177_v9 = vcombine.low %v5448_v41, %v5447_v4  ;;  %v5450_v0 = vld [vmem:[#allocation23_spill] sm:$0xff]  ;;  %v2341_v42 = vcombine.low %v5452_v47, %v5451_v10  ;;  %v5453_v45 = vcombine.low %v4676_v61, %v4691_v46 }
 0x204   : > { %v2046_v7 = vrot.slane %v5443_v35, %v3863_v19  ;;  %v2435_v24 = vrot.slane %v5444_v53, %v3863_v19  ;;  %v2735_v51 = vcombine.low %v2708_v36, %v2717_v25  ;;  %v3059_v37 = vcombine.high %v2708_v36, %v2717_v25  ;;  %v5455_v63 = vld [vmem:[#allocation31_spill] sm:$0xff]  ;;  %v5456_v25 = vld [vmem:[#allocation33_spill] sm:$0xff]  ;;  %v5457_v53 = vld [vmem:[#allocation32_spill] sm:$0xff] }
 0x205   : > { %v1632_v16 = vcombine.low %v5450_v0, %v5449_v17  ;;  %v4981_v62 = vrot.slane %v5453_v45, %v3863_v19  ;;  %v1967_v5 = vrot.slane %v1960_v14, %v3863_v19  ;;  %v1886_v2 = vcombine.low %v4699_v15, %v4710_v34 }
 0x206   : > { %2047 = vrot.lane.b32.xlu0 %v2046_v7, %s3504_s28  ;;  %2436 = vrot.lane.b32.xlu1 %v2435_v24, %s3504_s28  ;;  %v2639_v20 = vcombine.low %v4865_v33, %v4875_v1  ;;  %v2589_v40 = vcombine.low %v4895_v54, %v4908_v23  ;;  %v1936_v61 = vcombine.low %v4949_v18, %v4952_v32 }
 0x207   : > { %v1917_v46 = vrot.slane %v1910_v13, %v3863_v19  ;;  %v1980_v14 = vrot.slane %v3040_v52, %v3863_v19  ;;  %v1930_v60 = vrot.slane %v3038_v48, %v3863_v19  ;;  %v2633_v29 = vrot.slane %v3056_v27, %v3863_v19 }
 0x208   : > { %v5022_v31 = vrot.slane %v2415_v56, %v3863_v19  ;;  %v2657_v13 = vrot.slane %v3057_v3, %v3863_v19  ;;  %v2670_v28 = vrot.slane %v2663_v55, %v3863_v19  ;;  %v2607_v39 = vrot.slane %v3055_v44, %v3863_v19  ;;  %v5454_v3 = vld [vmem:[#allocation28_spill] sm:$0xff] }
 0x209   : > { %v2683_v49 = vrot.slane %v3058_v30, %v3863_v19  ;;  %v1954_v6 = vrot.slane %v3039_v59, %v3863_v19  ;;  %v2620_v57 = vrot.slane %v2613_v26, %v3863_v19  ;;  %v5041_v48 = vrot.slane %v2391_v43, %v3863_v19 }
 0x20a   : > { %2373 = vrot.lane.b32.xlu0 %v4981_v62, %s3503_s6  ;;  %1968 = vrot.lane.b32.xlu1 %v1967_v5, %s3503_s6  ;;  %v2742_v8 = vrot.slane %v2735_v51, %v3863_v19  ;;  %v2755_v38 = vrot.slane %v3059_v37, %v3863_v19  ;;  %v2596_v1 = vrot.slane %v2589_v40, %v3863_v19 }
 0x20e   : > { %1918 = vrot.lane.b32.xlu0 %v1917_v46, %s3503_s6  ;;  %1981 = vrot.lane.b32.xlu1 %v1980_v14, %s3504_s28  ;;  %v5458_v46 = vld [vmem:[#allocation42_spill] sm:$0xff] }
 0x212   : > { %1931 = vrot.lane.b32.xlu0 %v1930_v60, %s3504_s28  ;;  %2634 = vrot.lane.b32.xlu1 %v2633_v29, %s3504_s28 }
 0x216   : > { %2423 = vrot.lane.b32.xlu0 %v5022_v31, %s3503_s6  ;;  %2658 = vrot.lane.b32.xlu1 %v2657_v13, %s3502_s18 }
 0x21a   : > { %2730 = vrot.lane.b32.xlu0 %v2435_v24, %s3502_s18  ;;  %2671 = vrot.lane.b32.xlu1 %v2670_v28, %s3503_s6  ;;  %v919_v24 = vcombine.low %v5457_v53, %v5456_v25 }
 0x21c   : > { %v926_v5 = vrot.slane %v919_v24, %v3863_v19 }
 0x21e   : > { %2608 = vrot.lane.b32.xlu0 %v2607_v39, %s3502_s18  ;;  %2684 = vrot.lane.b32.xlu1 %v2683_v49, %s3504_s28  ;;  %v989_v52 = vpop.permute.xlu0 %988 }
 0x21f   : > { %v1023_v26 = vsel %vm1017_vm10, %v5454_v3, %v989_v52 }
 0x221   : > { %v1319_v56 = vpop.permute.xlu1 %1318 }
 0x222   : > { %1955 = vrot.lane.b32.xlu0 %v1954_v6, %s3502_s18  ;;  %2720 = vrot.lane.b32.xlu1 %v4892_v21, %s3502_s18  ;;  %v1350_v43 = vsel %vm1017_vm10, %v5455_v63, %v1319_v56  ;;  %v1234_v6 = vrot.slane %v1227_v50, %v3863_v19  ;;  %s3366_s18 = sshll.u32 %s3505_s23, 4  ;;  %s3367_s18 = int_to_ptr.vmem [resolvable:$false] %s3366_s18 }
 0x223   : > { %p3369_p4 = scmp.lt.s32.totalorder %s5160_s22, %s3367_s18 }
 0x225   : > { %v1002_v27 = vpop.permute.xlu1 %1001  ;;  %v1312_v21 = vpop.permute.xlu0 %1311 }
 0x226   : > { %2621 = vrot.lane.b32.xlu0 %v2620_v57, %s3503_s6  ;;  %2723 = vrot.lane.b32.xlu1 %v5041_v48, %s3503_s6  ;;  %v1024_v44 = vsel %vm1019_vm11, %v1023_v26, %v1002_v27  ;;  %v1184_v26 = vrot.slane %v1177_v9, %v3863_v19 }
 0x229   : > { %v1015_v55 = vpop.permute.xlu1 %1014 }
 0x22a   : > { %2743 = vrot.lane.b32.xlu0 %v2742_v8, %s3503_s6  ;;  %2726 = vrot.lane.b32.xlu1 %v2409_v11, %s3504_s28  ;;  %v1025_v30 = vsel %vm1021_vm12, %v1024_v44, %v1015_v55  ;;  %v939_v11 = vpop.permute.xlu0 %938  ;;  %s3368_s6 = scalar_lea.vmem %s3367_s18, 512 }
 0x22b   : > { %1027 = vst [vmem:[#allocation3 + $0x8] sm:$0xf] %v1025_v30  ;;  %v1018_v29 = vsel %vm1017_vm10, %v926_v5, %v939_v11  ;;  %p3370_p9 = scmp.lt.s32.totalorder %s3368_s6, %s3362_s5 }
 0x22d   : > { %v1315_v36 = vpop.permute.xlu1 %1314  ;;  %p3371_p13 = por %p3370_p9, %p3369_p4 }
 0x22e   : > { %2756 = vrot.lane.b32.xlu0 %v2755_v38, %s3504_s28 }
 0x22f   : > { %p3372_p6 = pnand %p3371_p13, %p3365_p1 }
 0x230   : > { %v1332_v35 = vpop.permute.xlu0 %1331 }
 0x231   : > { %v1351_v59 = vsel %vm1019_vm11, %v1350_v43, %v1332_v35  ;;  %v1639_v43 = vrot.slane %v1632_v16, %v3863_v19 }
 0x232   : > { %v1345_v7 = vpop.permute.xlu1 %1344 }
 0x233   : > { %v1352_v51 = vsel %vm1021_vm12, %v1351_v59, %v1345_v7 }
 0x234   : > { %1354 = vst [vmem:[#allocation3 + $0x18] sm:$0xf] %v1352_v51  ;;  %v952_v37 = vpop.permute.xlu0 %951 }
 0x235   : > { %v1020_v28 = vsel %vm1019_vm11, %v1018_v29, %v952_v37 }
 0x236   : > { %v1309_v45 = vpop.permute.xlu1 %1308 }
 0x237   : > { %v1347_v14 = vsel %vm1017_vm10, %v5458_v46, %v1309_v45  ;;  %v5459_v46 = vld [vmem:[#allocation34_spill] sm:$0xff] }
 0x238   : > { %v1348_v60 = vsel %vm1019_vm11, %v1347_v14, %v1312_v21  ;;  %v965_v39 = vpop.permute.xlu0 %964 }
 0x239   : > { %v1349_v13 = vsel %vm1021_vm12, %v1348_v60, %v1315_v36  ;;  %v1022_v49 = vsel %vm1021_vm12, %v1020_v28, %v965_v39 }
 0x23a   : > { %1353 = vst [vmem:[#allocation3 + $0x10] sm:$0xf] %v1349_v13  ;;  %1026 = vst [vmem:[#allocation3] sm:$0xf] %v1022_v49 }
 0x23b   : > { %v1260_v8 = vpop.permute.xlu1 %1259 }
 0x23e   : > { %v1247_v57 = vpop.permute.xlu0 %1246 }
 0x23f   : > { %v1278_v56 = vsel %vm1017_vm10, %v1234_v6, %v1247_v57  ;;  %v5460_v6 = vld [vmem:[#allocation27_spill] sm:$0xff] }
 0x240   : > { %v1279_v52 = vsel %vm1019_vm11, %v1278_v56, %v1260_v8 }
 0x242   : > { %v1273_v38 = vpop.permute.xlu0 %1272 }
 0x243   : > { %v1280_v27 = vsel %vm1021_vm12, %v1279_v52, %v1273_v38 }
 0x244   : > { %v1284_v21 = vrot.slane %v1280_v27, 4 }
 0x246   : > { %1288 = vst [vmem:[#allocation3 + $0x8] sm:$0xf0] %v1284_v21 }
 0x247   : > { %v1197_v3 = vpop.permute.xlu1 %1196 }
 0x248   : > { %v1275_v58 = vsel %vm1017_vm10, %v1184_v26, %v1197_v3 }
 0x24b   : > { %v1210_v12 = vpop.permute.xlu1 %1209  ;;  %v1223_v50 = vpop.permute.xlu0 %1222 }
 0x24c   : > { %v1276_v44 = vsel %vm1019_vm11, %v1275_v58, %v1210_v12 }
 0x24d   : > { %v1277_v55 = vsel %vm1021_vm12, %v1276_v44, %v1223_v50  ;;  %v2769_v8 = vld [vmem:[#allocation3 + $0x8] sm:$0xff]  ;;  %v2348_v50 = vrot.slane %v2341_v42, %v3863_v19 }
 0x24e   : > { %v1283_v30 = vrot.slane %v1277_v55, 4 }
 0x24f   : > { %v1678_v11 = vpop.permute.xlu1 %1677 }
 0x250   : > { %1287 = vst [vmem:[#allocation3] sm:$0xf0] %v1283_v30 }
 0x252   : > { %v1652_v36 = vpop.permute.xlu0 %1651 }
 0x253   : > { %v1715_v63 = vpop.permute.xlu1 %1714  ;;  %v1730_v4 = vsel %vm1017_vm10, %v1639_v43, %v1652_v36 }
 0x257   : > { %v1665_v41 = vpop.permute.xlu0 %1664  ;;  %v2768_v27 = vld [vmem:[#allocation3] sm:$0xff] }
 0x258   : > { %v1731_v9 = vsel %vm1019_vm11, %v1730_v4, %v1665_v41  ;;  %v1893_v4 = vrot.slane %v1886_v2, %v3863_v19 }
 0x259   : > { %v1728_v35 = vpop.permute.xlu1 %1727  ;;  %v1732_v7 = vsel %vm1021_vm12, %v1731_v9, %v1678_v11 }
 0x25a   : > { %v1738_v25 = vrot.slane %v1732_v7, 4 }
 0x25b   : > { %v2012_v53 = vpop.permute.xlu0 %2011 }
 0x25c   : > { %1742 = vst [vmem:[#allocation3 + $0x10] sm:$0xf0] %v1738_v25  ;;  %v2050_v14 = vsel %vm1017_vm10, %v5459_v46, %v2012_v53 }
 0x25d   : > { %v2015_v24 = vpop.permute.xlu1 %2014 }
 0x25e   : > { %v2051_v60 = vsel %vm1019_vm11, %v2050_v14, %v2015_v24 }
 0x25f   : > { %v1702_v59 = vpop.permute.xlu0 %1701 }
 0x260   : > { %v1733_v51 = vsel %vm1017_vm10, %v4757_v22, %v1702_v59  ;;  %v2646_v59 = vrot.slane %v2639_v20, %v3863_v19 }
 0x261   : > { %v2035_v37 = vpop.permute.xlu1 %2034  ;;  %v1734_v17 = vsel %vm1019_vm11, %v1733_v51, %v1715_v63 }
 0x262   : > { %v1735_v0 = vsel %vm1021_vm12, %v1734_v17, %v1728_v35 }
 0x263   : > { %v1739_v16 = vrot.slane %v1735_v0, 4  ;;  %v2022_v45 = vpop.permute.xlu0 %2021  ;;  %v2770_v49 = vld [vmem:[#allocation3 + $0x10] sm:$0xff] }
 0x264   : > { %v2053_v57 = vsel %vm1017_vm10, %v5460_v6, %v2022_v45  ;;  %v3159_v21 = vpack.c.bf16 %v2770_v49, %v2768_v27 }
 0x265   : > { %1743 = vst [vmem:[#allocation3 + $0x18] sm:$0xf0] %v1739_v16  ;;  %v2054_v3 = vsel %vm1019_vm11, %v2053_v57, %v2035_v37  ;;  %v1943_v16 = vrot.slane %v1936_v61, %v3863_v19 }
 0x266   : > { %v2361_v5 = vpop.permute.xlu1 %2360 }
 0x267   : > { %v2018_v29 = vpop.permute.xlu0 %2017  ;;  %v2439_v55 = vsel %vm1017_vm10, %v2348_v50, %v2361_v5 }
 0x268   : > { %v2052_v13 = vsel %vm1021_vm12, %v2051_v60, %v2018_v29 }
 0x269   : > { %v2058_v39 = vrot.slane %v2052_v13, 4 }
 0x26b   : > { %2062 = vst [vmem:[#allocation3 + $0x20] sm:$0xf0] %v2058_v39 }
 0x26c   : > { %v2771_v56 = vld [vmem:[#allocation3 + $0x18] sm:$0xff] }
 0x26d   : > { %v3157_v38 = vpack.c.bf16 %v2771_v56, %v2769_v8 }
 0x26e   : > { %v2387_v28 = vpop.permute.xlu1 %2386 }
 0x26f   : > { %3158 = vmatprep.subr.bf16.mxu1 %v3157_v38 }
 0x270   : > { %3160 = vmatpush1.bf16.msra.mxu1 %v3159_v21  ;;  %v2767_v21 = vld [vmem:[%s5223_s3] sm:$0xff] }
 0x273   : > { %v1906_v22 = vpop.permute.xlu0 %1905 }
 0x274   : > { %v2411_v52 = vpop.permute.xlu1 %2410  ;;  %v1984_v10 = vsel %vm1017_vm10, %v1893_v4, %v1906_v22 }
 0x275   : > { %v2442_v7 = vsel %vm1017_vm10, %v5041_v48, %v2411_v52 }
 0x278   : > { %v2048_v26 = vpop.permute.xlu0 %2047  ;;  %v2437_v12 = vpop.permute.xlu1 %2436 }
 0x279   : > { %v2055_v58 = vsel %vm1021_vm12, %v2054_v3, %v2048_v26 }
 0x27a   : > { %v2059_v44 = vrot.slane %v2055_v58, 4 }
 0x27c   : > { %2063 = vst [vmem:[#allocation3 + $0x28] sm:$0xf0] %v2059_v44  ;;  %v2374_v30 = vpop.permute.xlu0 %2373  ;;  %v1969_v36 = vpop.permute.xlu1 %1968 }
 0x27d   : > { %v2440_v11 = vsel %vm1019_vm11, %v2439_v55, %v2374_v30 }
 0x27e   : > { %v2441_v63 = vsel %vm1021_vm12, %v2440_v11, %v2387_v28 }
 0x27f   : > { %2445 = vst [vmem:[#allocation3 + $0x30] sm:$0xf] %v2441_v63 }
 0x280   : > { %v1919_v43 = vpop.permute.xlu0 %1918  ;;  %v1982_v41 = vpop.permute.xlu1 %1981 }
 0x281   : > { %v1985_v47 = vsel %vm1019_vm11, %v1984_v10, %v1919_v43 }
 0x284   : > { %v1932_v42 = vpop.permute.xlu0 %1931  ;;  %v2635_v35 = vpop.permute.xlu1 %2634 }
 0x285   : > { %v1986_v9 = vsel %vm1021_vm12, %v1985_v47, %v1932_v42 }
 0x286   : > { %1990 = vst [vmem:[#allocation3 + $0x20] sm:$0xf] %v1986_v9 }
 0x288   : > { %v2424_v25 = vpop.permute.xlu0 %2423  ;;  %v2659_v24 = vpop.permute.xlu1 %2658 }
 0x289   : > { %v2443_v53 = vsel %vm1019_vm11, %v2442_v7, %v2424_v25  ;;  %v2690_v51 = vsel %vm1017_vm10, %v2646_v59, %v2659_v24 }
 0x28a   : > { %v2444_v15 = vsel %vm1021_vm12, %v2443_v53, %v2437_v12 }
 0x28b   : > { %2446 = vst [vmem:[#allocation3 + $0x38] sm:$0xf] %v2444_v15 }
 0x28c   : > { %v2731_v34 = vpop.permute.xlu0 %2730  ;;  %v2672_v2 = vpop.permute.xlu1 %2671 }
 0x28d   : > { %v2691_v17 = vsel %vm1019_vm11, %v2690_v51, %v2672_v2  ;;  %v2762_v22 = vsel %vm1017_vm10, %v5022_v31, %v2731_v34  ;;  %v2772_v56 = vld [vmem:[#allocation3 + $0x20] sm:$0xff] }
 0x290   : > { %v2609_v37 = vpop.permute.xlu0 %2608  ;;  %v2685_v48 = vpop.permute.xlu1 %2684 }
 0x291   : > { %v2692_v0 = vsel %vm1021_vm12, %v2691_v17, %v2685_v48  ;;  %v2687_v60 = vsel %vm1017_vm10, %v2596_v1, %v2609_v37 }
 0x292   : > { %v2696_v45 = vrot.slane %v2692_v0, 4 }
 0x294   : > { %v1956_v5 = vpop.permute.xlu0 %1955  ;;  %2700 = vst [vmem:[#allocation3 + $0x38] sm:$0xf0] %v2696_v45  ;;  %v2721_v33 = vpop.permute.xlu1 %2720 }
 0x295   : > { %v1987_v46 = vsel %vm1017_vm10, %v1943_v16, %v1956_v5  ;;  %v2759_v28 = vsel %vm1017_vm10, %v4981_v62, %v2721_v33 }
 0x296   : > { %v1988_v20 = vsel %vm1019_vm11, %v1987_v46, %v1969_v36 }
 0x297   : > { %v1989_v14 = vsel %vm1021_vm12, %v1988_v20, %v1982_v41 }
 0x298   : > { %1991 = vst [vmem:[#allocation3 + $0x28] sm:$0xf] %v1989_v14  ;;  %v2622_v18 = vpop.permute.xlu0 %2621  ;;  %v2724_v61 = vpop.permute.xlu1 %2723 }
 0x299   : > { %v2688_v32 = vsel %vm1019_vm11, %v2687_v60, %v2622_v18  ;;  %v2760_v19 = vsel %vm1019_vm11, %v2759_v28, %v2724_v61 }
 0x29a   : > { %v2689_v29 = vsel %vm1021_vm12, %v2688_v32, %v2635_v35 }
 0x29b   : > { %v2695_v13 = vrot.slane %v2689_v29, 4  ;;  %v2775_v23 = vld [vmem:[#allocation3 + $0x38] sm:$0xff] }
 0x29c   : > { %v2744_v39 = vpop.permute.xlu0 %2743  ;;  %v2727_v54 = vpop.permute.xlu1 %2726 }
 0x29d   : > { %2699 = vst [vmem:[#allocation3 + $0x30] sm:$0xf0] %v2695_v13  ;;  %v2761_v40 = vsel %vm1021_vm12, %v2760_v19, %v2727_v54  ;;  %v2763_v6 = vsel %vm1019_vm11, %v2762_v22, %v2744_v39 }
 0x29e   : > { %2765 = vst [vmem:[#allocation3 + $0x40] sm:$0xf] %v2761_v40 }
 0x29f   : > { %v2773_v49 = vld [vmem:[#allocation3 + $0x28] sm:$0xff] }
 0x2a0   : > { %v2757_v57 = vpop.permute.xlu0 %2756  ;;  %v3161_v8 = vpack.c.bf16 %v2775_v23, %v2773_v49 }
 0x2a1   : > { %v2764_v62 = vsel %vm1021_vm12, %v2763_v6, %v2757_v57 }
 0x2a2   : > { %2766 = vst [vmem:[#allocation3 + $0x48] sm:$0xf] %v2764_v62  ;;  %3162 = vmatprep.subr.bf16.mxu1 %v3161_v8 }
 0x2a4   : > { %v2774_v52 = vld [vmem:[#allocation3 + $0x30] sm:$0xff] }
 0x2a5   : > { %v3163_v38 = vpack.c.bf16 %v2774_v52, %v2772_v56  ;;  %v2776_v27 = vld [vmem:[#allocation3 + $0x40] sm:$0xf] }
 0x2a7   : > { %3164 = vmatpush1.bf16.msra.mxu1 %v3163_v38 }
 0x2a9   : > { %v2777_v31 = vld [vmem:[#allocation3 + $0x48] sm:$0xf] }
 0x2aa   : > { %3060 = vmatprep.subr.msk.mxu1 %vm2782_vm13, %v2777_v31 }
 0x2ab   : > { %3061 = vmatpush1.msk.msra.mxu1 %vm2782_vm13, %v2776_v27 }
 0x2ac   : > { %3062 = vmatmul.mubr.msk.f32.vlgmr.msra.gmra.mrb[14].mxu1 %vm2778_vm14, %v2767_v21 }
 0x37f   : > { %v2855_v3 = vpop.f32.mrb[14].mxu1 }
 0x380   : > { %vm2860_vm15 = vcmp.ge.f32.partialorder %v2855_v3, 0.0  ;;  %v2862_v26 = vmul.f32 0.1, %v2855_v3  ;;  %v2857_v58 = vpop.f32.mrb[15].mxu1 }
 0x381   : > { %vm2861_vm0 = vcmp.ge.f32.partialorder %v2857_v58, 0.0  ;;  %v2863_v12 = vmul.f32 0.1, %v2857_v58 }
 0x382   : > { %v2864_v50 = vsel %vm2860_vm15, %v2855_v3, %v2862_v26 }
 0x383   : > { %2866 = vst [vmem:[%s222_s15] sm:$0xff] %v2864_v50  ;;  %v2865_v44 = vsel %vm2861_vm0, %v2857_v58, %v2863_v12 }
 0x384   : > { %2867 = vst [vmem:[%s222_s15 + $0x8] sm:$0xff] %v2865_v44 }
 0x385   : > { %3375 = shalt.err (!%p3372_p6)
}
 0x386   : > { %s3376_s28 = scalar_lea.hbm %s5158_s17, 256  ;;  %s3380_s24 = scalar_lea.hbm %s5224_s4, 2048 }
 0x387   : > { %p3377_p7 = scmp.ne.s32.totalorder %s5158_s17, %s3376_s28  ;;  %p3381_p0 = scmp.lt.u32.totalorder %s5158_s17, %s5224_s4 }
 0x388   : > { %p3382_p2 = scmp.lt.u32.totalorder %s3380_s24, %s3376_s28  ;;  %p3384_p5 = scmp.lt.u32.totalorder %s3376_s28, %s5158_s17 }
 0x389   : > { %p3378_p10 = pnand %p3377_p7, %p5461_p8 }
 0x38a   : > { %p3383_p3 = por %p3382_p2, %p3381_p0 }
 0x38b   : > { %p3379_p12 = pneg %p3378_p10 }
 0x38c   : > { %p3385_p11 = por %p3384_p5, %p3383_p3 }
 0x38e   : > { %p3386_p1 = pnand %p3385_p11, %p3379_p12 }
 0x390   : > { %3389 = shalt.err (!%p3386_p1)
}
 0x391   : > { %3173 = dma.vmem_to_hbm [thread:$0]  (%p5461_p8), %s5160_s22, 256, %s5158_s17, %s2869_s0  }
 0x392 PF: > { %s5462_s12 = sld [smem:[#allocation16_spill]]  ;;  %s5463_s10 = sld [smem:[#allocation18_spill]] }
 0x393   : > { %p3190_p4 = scmp.ge.s32.totalorder %s3490_s8, 2 }
 0x398   : > { %s2897_s11 = sand.u32 1, %s5462_s12   ;;  %p5464_p9 = scmp.ne.s32.totalorder %s5463_s10, 0 }
 0x399   : > { %s2898_s15 = scalar_lea.sflag [#allocation8], %s2897_s11 }
 0x39a   : > { %p3184_p13 = pnand %p3190_p4, %p5464_p9 }
 0x39c   : > { %3445 = dma.done.wait (!%p3184_p13), %s2898_s15, 256  }
 0x39d   : > { %3447 = vsyncadd (!%p3184_p13), %s2898_s15, 4294967040  ;;  %s25_s8 = sadd.s32 1, %s3490_s8   ;;  %s5465_s0 = sld [smem:[#allocation17_spill]] }
 0x39e   : > { %p22_p6 = scmp.ge.s32.totalorder %s25_s8, 10   ;;  %s5466_s6 = sld [smem:[#allocation19_spill]] }
 0x39f   : > { %s5467_s14 = sld [smem:[#allocation20_spill]]  ;;  %s5468_s25 = smov %s3454_s26 }
 0x3a0   : > { %s5469_s26 = smov %s3458_s27  ;;  %s5470_s27 = smov %s3683_s2 }
 0x3a1   : > { %s5471_s28 = smov %s3466_s29  ;;  %s5472_s29 = smov %s3470_s30 }
 0x3a2   : > { %s5473_s30 = smov %s3678_s20  ;;  %s5474_s5 = smov %s3486_s7 }
 0x3a3   :  { %24 = sbr.rel (!%p22_p6) target bundleno = 22 (0x16), region = 93 }
 0x3a5   : > { %s5475_s7 = smov %s5467_s14 }
 0x3aa   :  { %2903 = vsyncpa [#allocation7], 1 }
 0x3ab   :  { %2905 = vsyncpa [#allocation7 + $0x1], 1 }
 0x3ac   :  { %2906 = vsyncpa [#allocation10], 1 }
 0x3ad   :  { %2907 = vsyncpa [#allocation8], 1 }
 0x3ae   :  { %2909 = vsyncpa [#allocation8 + $0x1], 1 }

</bundles_post_ra>
